<compile_context>
chip_gen: v7x
topology: tpu7x:2x2x1
jax: 0.10.0
libtpu: 0.0.40
codegen_flags: <defaults>
</compile_context>

<pallas_src>
import jax
import jax.numpy as jnp
from jax import lax
from jax.experimental import pallas as pl
from jax.experimental.pallas import tpu as pltpu


# ----------------------------------------------------------------------------- #
# In-kernel helpers
# ----------------------------------------------------------------------------- #
def _dx_slab(r):
    """r: (R, W, C) bf16 -> (R*W, 3C) patch slab for one dy row offset.

    Last-dim blocks ordered [dx=-1, dx=0, dx=+1] (kw-major, cin within), zero
    padded at the left/right image edge.  Only W (sublane) shifts + one 3-wide
    lane concat; the dy offsets are handled by the caller via halo rows.
    """
    R, W, C = r.shape
    zc = jnp.zeros((R, 1, C), r.dtype)
    left = jnp.concatenate([zc, r[:, :-1, :]], axis=1)    # tap at w-1  (kw = 0)
    right = jnp.concatenate([r[:, 1:, :], zc], axis=1)    # tap at w+1  (kw = 2)
    return jnp.concatenate([left, r, right], axis=-1).reshape(R * W, 3 * C)


def _conv3x3(windows, w_ref):
    """3x3 conv as 3 accumulating K=3C matmuls (one per dy row offset).

    windows : 3 callables returning the dy=-1/0/+1 row-shifted (R, W, C) bf16 views
    w_ref   : (3, 3C, C) bf16 weights, [dy][kw, cin][cout]
    returns : (R*W, C) float32
    """
    acc = None
    for dyi in range(3):
        p = jnp.dot(_dx_slab(windows[dyi]()), w_ref[dyi],
                    preferred_element_type=jnp.float32)
        acc = p if acc is None else acc + p
    return acc


def _resblock_kernel(x_ref, top_ref, bot_ref, w1_ref, w2_ref, t1_ref, t2_ref,
                     alpha_ref, o_ref):
    """One (batch, row-tile) grid step.

    x_ref   : (1, TH, W, C)  f32 body rows of this tile (unpadded input)
    top_ref : (1, 2, W, C)   f32 rows [r0-2, r0)   (clamped at the top edge)
    bot_ref : (1, 2, W, C)   f32 rows [r0+TH, ..)  (clamped at the bottom edge)
    w1/w2   : (3, 3C, C)     bf16 conv weights with the BN scale folded in
    t1/t2   : (1, C)         f32 fused BN shift (conv bias folded in)
    alpha   : (1, 1)         PReLU slope (SMEM scalar)
    o_ref   : (1, TH, W, C)  f32 output tile
    """
    _, TH, W, C = x_ref.shape
    t = pl.program_id(1)
    nt = pl.num_programs(1)
    alpha = alpha_ref[0, 0]

    x = x_ref[0]                                  # (TH, W, C) f32 — exact residual
    xb = x.astype(jnp.bfloat16)
    # Halo rows; at the true image boundary the (clamped) loads are masked to zero.
    topb = jnp.where(t > 0, top_ref[0], 0.0).astype(jnp.bfloat16)
    botb = jnp.where(t < nt - 1, bot_ref[0], 0.0).astype(jnp.bfloat16)

    # ---- conv1 (+ folded BN1 scale) over the TH+2 intermediate rows [-1, TH] ----
    win1 = (
        lambda: jnp.concatenate([topb, xb], axis=0),                   # dy = -1
        lambda: jnp.concatenate([topb[1:2], xb, botb[0:1]], axis=0),   # dy =  0
        lambda: jnp.concatenate([xb, botb], axis=0),                   # dy = +1
    )
    y = _conv3x3(win1, w1_ref) + t1_ref[...]      # ((TH+2)*W, C) f32, BN1 shift
    y = jnp.where(y > 0, y, alpha * y)            # PReLU
    yb = y.astype(jnp.bfloat16).reshape(TH + 2, W, C)

    # conv2 zero-pads the *intermediate* feature map at the image boundary: the
    # recomputed rows that fall outside the image must be zero, not conv1(-1/H).
    ridx = lax.broadcasted_iota(jnp.int32, (TH + 2, 1, 1), 0)
    valid = jnp.logical_and(jnp.logical_or(t > 0, ridx != 0),
                            jnp.logical_or(t < nt - 1, ridx != TH + 1))
    yb = jnp.where(valid, yb, jnp.zeros_like(yb))

    # ---- conv2 (+ folded BN2 scale) over the TH output rows ----
    win2 = (lambda: yb[0:TH], lambda: yb[1:TH + 1], lambda: yb[2:TH + 2])
    z = (_conv3x3(win2, w2_ref) + t2_ref[...]).reshape(TH, W, C)

    # ---- residual add in exact f32 ----
    o_ref[0] = x + z


# ----------------------------------------------------------------------------- #
# Wrapper: tiling / VMEM budgeting / parameter folding
# ----------------------------------------------------------------------------- #
def _vmem_capacity_bytes():
    try:
        return int(pltpu.get_tpu_info().vmem_capacity_bytes)
    except Exception:
        return 64 * 1024 * 1024        # conservative (v7x per-core VMEM)


def _step_vmem_bytes(TH, W, C):
    """Honest per-grid-step VMEM footprint estimate (review item)."""
    f32, bf16 = 4, 2
    io = 2 * 2 * TH * W * C * f32          # double-buffered body in + out blocks
    halo = 2 * 2 * 2 * W * C * f32         # double-buffered 2-row halo blocks (x2)
    wts = 2 * 9 * C * C * bf16             # both weight slabs (resident)
    win = (TH + 4) * W * C * bf16          # bf16 body + halo copies
    slab = (TH + 2) * W * 3 * C * bf16     # one dy im2col slab (K = 3C)
    shift = 2 * (TH + 2) * W * C * bf16    # dx-shifted temporaries
    acc1 = 2 * (TH + 2) * W * C * f32      # conv1 f32 accumulator + matmul partial
    acc2 = 2 * TH * W * C * f32            # conv2 f32 accumulator + residual temp
    return io + halo + wts + win + slab + shift + acc1 + acc2


def _pick_tile_h(H, W, C, vmem_cap):
    """Largest even proper divisor of H (<= 64 rows) whose step fits the budget."""
    budget = 0.4 * vmem_cap
    cands = [d for d in range(2, min(H, 64) + 1, 2) if H % d == 0 and d < H]
    for d in sorted(cands, reverse=True):
        if _step_vmem_bytes(d, W, C) <= budget:
            return d
    if cands:
        return cands[0]
    return H


def residual_block_nhwc(x_nhwc, params):
    """NHWC in / NHWC out (float32).  Use this when chaining blocks in a trunk."""
    B, H, W, C = x_nhwc.shape
    assert H % 2 == 0, "row-halo tiling assumes an even number of rows"
    eps = params["eps"]

    vmem_cap = _vmem_capacity_bytes()
    TH = _pick_tile_h(H, W, C, vmem_cap)
    T = H // TH

    # Fuse conv bias + eval-mode BN:  BN(conv + b) = s*conv + (s*(b - mean) + beta),
    # s = gamma / sqrt(var + eps).  The scale s is folded into the conv weights.
    s1 = params["gamma1"] / jnp.sqrt(params["var1"] + eps)
    t1 = params["beta1"] + s1 * (params["b1"] - params["mean1"])
    s2 = params["gamma2"] / jnp.sqrt(params["var2"] + eps)
    t2 = params["beta2"] + s2 * (params["b2"] - params["mean2"])

    def fold(w, s):
        # (Cout, Cin, kh, kw) -> (kh, kw, Cin, Cout), scale per output channel,
        # then (3, 3*Cin, Cout) bf16 for the MXU (dy-major, then kw, then cin).
        wf = jnp.transpose(w, (2, 3, 1, 0)) * s[None, None, None, :]
        return wf.reshape(3, 3 * C, C).astype(jnp.bfloat16)

    w1p, w2p = fold(params["w1"], s1), fold(params["w2"], s2)
    t1 = t1.reshape(1, C).astype(jnp.float32)
    t2 = t2.reshape(1, C).astype(jnp.float32)
    alpha = jnp.full((1, 1), params["alpha"], jnp.float32)

    est = _step_vmem_bytes(TH, W, C)
    vmem_limit = int(min(max(2 * est + (4 << 20), 16 << 20), int(0.5 * vmem_cap)))

    cost = pl.CostEstimate(
        flops=int(2 * 2 * 9 * C * C * H * W * B),
        transcendentals=0,
        bytes_accessed=int(2 * B * H * W * C * 4           # f32 activations in/out
                           + 2 * 9 * C * C * 2             # bf16 weights
                           + B * T * 4 * W * C * 4))       # halo re-reads

    # Halo index maps (block size 2 along H): clamp at the image edge; the kernel
    # masks the clamped loads to zero.
    top_map = lambda b, t: (b, jnp.maximum(t * (TH // 2) - 1, 0), 0, 0)
    bot_map = lambda b, t: (b, jnp.minimum(t * (TH // 2) + TH // 2, H // 2 - 1), 0, 0)

    return pl.pallas_call(
        _resblock_kernel,
        out_shape=jax.ShapeDtypeStruct((B, H, W, C), jnp.float32),
        grid=(B, T),
        in_specs=[
            pl.BlockSpec((1, TH, W, C), lambda b, t: (b, t, 0, 0)),   # body rows
            pl.BlockSpec((1, 2, W, C), top_map),                      # top halo
            pl.BlockSpec((1, 2, W, C), bot_map),                      # bottom halo
            pl.BlockSpec((3, 3 * C, C), lambda b, t: (0, 0, 0)),      # w1 (scaled)
            pl.BlockSpec((3, 3 * C, C), lambda b, t: (0, 0, 0)),      # w2 (scaled)
            pl.BlockSpec((1, C), lambda b, t: (0, 0)),                # t1
            pl.BlockSpec((1, C), lambda b, t: (0, 0)),                # t2
            pl.BlockSpec(memory_space=pltpu.MemorySpace.SMEM),        # alpha
        ],
        out_specs=pl.BlockSpec((1, TH, W, C), lambda b, t: (b, t, 0, 0)),
        compiler_params=pltpu.CompilerParams(
            dimension_semantics=("parallel", "parallel"),
            vmem_limit_bytes=vmem_limit,
        ),
        cost_estimate=cost,
    )(x_nhwc, x_nhwc, x_nhwc, w1p, w2p, t1, t2, alpha)


def residual_block(x_nchw, params):
    """PyTorch-equivalent forward: NCHW in, NCHW out (float32)."""
    # TODO(synk): when chaining SRGAN residual blocks, keep activations NHWC across
    # the trunk (call residual_block_nhwc directly) and transpose only at the model
    # boundaries — each transpose here is a full extra HBM round trip.
    x_nhwc = jnp.transpose(x_nchw, (0, 2, 3, 1)).astype(jnp.float32)
    out_nhwc = residual_block_nhwc(x_nhwc, params)
    return jnp.transpose(out_nhwc, (0, 3, 1, 2))


# ----------------------------------------------------------------------------- #
# Reference + test
# ----------------------------------------------------------------------------- #
def init_params(key, C):
    ks = jax.random.split(key, 12)
    return {
        "w1": 0.1 * jax.random.normal(ks[0], (C, C, 3, 3), jnp.float32),
        "b1": 0.1 * jax.random.normal(ks[1], (C,), jnp.float32),
        "w2": 0.1 * jax.random.normal(ks[2], (C, C, 3, 3), jnp.float32),
        "b2": 0.1 * jax.random.normal(ks[3], (C,), jnp.float32),
        "gamma1": 1.0 + 0.1 * jax.random.normal(ks[4], (C,), jnp.float32),
        "beta1": 0.1 * jax.random.normal(ks[5], (C,), jnp.float32),
        "mean1": 0.1 * jax.random.normal(ks[6], (C,), jnp.float32),
        "var1": jax.random.uniform(ks[7], (C,), jnp.float32, 0.5, 1.5),
        "gamma2": 1.0 + 0.1 * jax.random.normal(ks[8], (C,), jnp.float32),
        "beta2": 0.1 * jax.random.normal(ks[9], (C,), jnp.float32),
        "mean2": 0.1 * jax.random.normal(ks[10], (C,), jnp.float32),
        "var2": jax.random.uniform(ks[11], (C,), jnp.float32, 0.5, 1.5),
        "alpha": 0.25,   # nn.PReLU() default single shared slope
        "eps": 0.8,      # BatchNorm2d(in_features, 0.8) -> eps = 0.8
    }


def reference(x, params):
    """Pure-JAX f32 reference of the PyTorch forward (eval-mode BN)."""
    eps = params["eps"]

    def conv(z, w, b):
        y = lax.conv_general_dilated(z, w, (1, 1), ((1, 1), (1, 1)),
                                     dimension_numbers=("NCHW", "OIHW", "NCHW"))
        return y + b[None, :, None, None]

    def bn(z, g, bta, m, v):
        inv = 1.0 / jnp.sqrt(v + eps)
        return (z - m[None, :, None, None]) * (g * inv)[None, :, None, None] \
            + bta[None, :, None, None]

    y = bn(conv(x, params["w1"], params["b1"]),
           params["gamma1"], params["beta1"], params["mean1"], params["var1"])
    y = jnp.where(y > 0, y, params["alpha"] * y)
    z = bn(conv(y, params["w2"], params["b2"]),
           params["gamma2"], params["beta2"], params["mean2"], params["var2"])
    return x + z


if __name__ == "__main__":
    B, C, H, W = 2, 4, 16, 16
    key = jax.random.PRNGKey(0)
    kx, kp = jax.random.split(key)
    x = jax.random.normal(kx, (B, C, H, W), jnp.float32)
    params = init_params(kp, C)

    out = jax.block_until_ready(residual_block(x, params))
    ref = reference(x, params)

    assert out.shape == x.shape and out.dtype == jnp.float32
    # bf16 conv operands (f32 accumulation + exact f32 residual) => relaxed
    # tolerance vs the pure-f32 reference.
    max_err = float(jnp.max(jnp.abs(out - ref)))
    assert max_err < 2e-2, f"mismatch vs reference: {max_err}"
    print("KERNEL_OK")
</pallas_src>

<mosaic_0001>
module attributes {stable_mosaic.version = 11 : i64} {
  func.func @_resblock_kernel(%arg0: i32, %arg1: i32, %arg2: memref<1x8x16x4xf32, #tpu.memory_space<vmem>>, %arg3: memref<1x2x16x4xf32, #tpu.memory_space<vmem>>, %arg4: memref<1x2x16x4xf32, #tpu.memory_space<vmem>>, %arg5: memref<3x12x4xbf16, #tpu.memory_space<vmem>>, %arg6: memref<3x12x4xbf16, #tpu.memory_space<vmem>>, %arg7: memref<1x4xf32, #tpu.memory_space<vmem>>, %arg8: memref<1x4xf32, #tpu.memory_space<vmem>>, %arg9: memref<1x1xf32, #tpu.memory_space<smem>>, %arg10: memref<1x8x16x4xf32, #tpu.memory_space<vmem>>) attributes {dimension_semantics = [#tpu.dimension_semantics<parallel>, #tpu.dimension_semantics<parallel>], iteration_bounds = array<i64: 2, 2>, scalar_prefetch = 0 : i64, scratch_operands = 0 : i64, tpu.core_type = #tpu.core_type<tc>, window_params = [{transform_indices = @transform_0, window_bounds = array<i64: 1, 8, 16, 4>}, {transform_indices = @transform_1, window_bounds = array<i64: 1, 2, 16, 4>}, {transform_indices = @transform_2, window_bounds = array<i64: 1, 2, 16, 4>}, {pipeline_mode = #tpu.pipeline_mode<synchronous>, transform_indices = @transform_3, window_bounds = array<i64: 3, 12, 4>}, {pipeline_mode = #tpu.pipeline_mode<synchronous>, transform_indices = @transform_4, window_bounds = array<i64: 3, 12, 4>}, {pipeline_mode = #tpu.pipeline_mode<synchronous>, transform_indices = @transform_5, window_bounds = array<i64: 1, 4>}, {pipeline_mode = #tpu.pipeline_mode<synchronous>, transform_indices = @transform_6, window_bounds = array<i64: 1, 4>}, {transform_indices = @transform_7, window_bounds = array<i64: 1, 1>}, {transform_indices = @transform_8, window_bounds = array<i64: 1, 8, 16, 4>}]} {
    %c0 = arith.constant 0 : index
    %c0_0 = arith.constant 0 : index
    %0 = memref.load %arg9[%c0, %c0_0] : memref<1x1xf32, #tpu.memory_space<smem>>
    %c0_1 = arith.constant 0 : index
    %c0_2 = arith.constant 0 : index
    %c0_3 = arith.constant 0 : index
    %c0_4 = arith.constant 0 : index
    %1 = vector.load %arg2[%c0_1, %c0_2, %c0_3, %c0_4] : memref<1x8x16x4xf32, #tpu.memory_space<vmem>>, vector<1x8x16x4xf32>
    %2 = vector.shape_cast %1 : vector<1x8x16x4xf32> to vector<8x16x4xf32>
    %3 = arith.truncf %2 : vector<8x16x4xf32> to vector<8x16x4xbf16>
    %c0_i32 = arith.constant 0 : i32
    %4 = arith.cmpi sgt, %arg1, %c0_i32 : i32
    %c0_5 = arith.constant 0 : index
    %c0_6 = arith.constant 0 : index
    %c0_7 = arith.constant 0 : index
    %c0_8 = arith.constant 0 : index
    %5 = vector.load %arg3[%c0_5, %c0_6, %c0_7, %c0_8] : memref<1x2x16x4xf32, #tpu.memory_space<vmem>>, vector<1x2x16x4xf32>
    %6 = vector.shape_cast %5 : vector<1x2x16x4xf32> to vector<2x16x4xf32>
    %cst = arith.constant 0.000000e+00 : f32
    %7 = vector.broadcast %cst : f32 to vector<2x16x4xf32>
    %8 = arith.select %4, %6, %7 : vector<2x16x4xf32>
    %9 = arith.truncf %8 : vector<2x16x4xf32> to vector<2x16x4xbf16>
    %c1_i32 = arith.constant 1 : i32
    %10 = arith.cmpi slt, %arg1, %c1_i32 : i32
    %c0_9 = arith.constant 0 : index
    %c0_10 = arith.constant 0 : index
    %c0_11 = arith.constant 0 : index
    %c0_12 = arith.constant 0 : index
    %11 = vector.load %arg4[%c0_9, %c0_10, %c0_11, %c0_12] : memref<1x2x16x4xf32, #tpu.memory_space<vmem>>, vector<1x2x16x4xf32>
    %12 = vector.shape_cast %11 : vector<1x2x16x4xf32> to vector<2x16x4xf32>
    %cst_13 = arith.constant 0.000000e+00 : f32
    %13 = vector.broadcast %cst_13 : f32 to vector<2x16x4xf32>
    %14 = arith.select %10, %12, %13 : vector<2x16x4xf32>
    %15 = arith.truncf %14 : vector<2x16x4xf32> to vector<2x16x4xbf16>
    %16 = tpu.concatenate %9, %3 in 0 : vector<2x16x4xbf16>, vector<8x16x4xbf16> -> vector<10x16x4xbf16>
    %cst_14 = arith.constant 0.000000e+00 : bf16
    %17 = vector.broadcast %cst_14 : bf16 to vector<10x1x4xbf16>
    %18 = vector.extract_strided_slice %16 {offsets = [0, 0, 0], sizes = [10, 15, 4], strides = [1, 1, 1]} : vector<10x16x4xbf16> to vector<10x15x4xbf16>
    %19 = tpu.concatenate %17, %18 in 1 : vector<10x1x4xbf16>, vector<10x15x4xbf16> -> vector<10x16x4xbf16>
    %20 = vector.extract_strided_slice %16 {offsets = [0, 1, 0], sizes = [10, 15, 4], strides = [1, 1, 1]} : vector<10x16x4xbf16> to vector<10x15x4xbf16>
    %21 = tpu.concatenate %20, %17 in 1 : vector<10x15x4xbf16>, vector<10x1x4xbf16> -> vector<10x16x4xbf16>
    %22 = tpu.concatenate %19, %16, %21 in 2 : vector<10x16x4xbf16>, vector<10x16x4xbf16>, vector<10x16x4xbf16> -> vector<10x16x12xbf16>
    %23 = vector.shape_cast %22 : vector<10x16x12xbf16> to vector<160x12xbf16>
    %c0_15 = arith.constant 0 : index
    %c0_16 = arith.constant 0 : index
    %c0_17 = arith.constant 0 : index
    %24 = vector.load %arg5[%c0_15, %c0_16, %c0_17] : memref<3x12x4xbf16, #tpu.memory_space<vmem>>, vector<1x12x4xbf16>
    %25 = vector.shape_cast %24 : vector<1x12x4xbf16> to vector<12x4xbf16>
    %cst_18 = arith.constant dense<0.000000e+00> : vector<160x4xf32>
    %26 = tpu.matmul %23, %25, %cst_18 {dimension_numbers = #tpu.dot_dimension_numbers<[1], [0], [0], [1], [0, 0, 1, 1], [], []>} : vector<160x12xbf16>, vector<12x4xbf16>, vector<160x4xf32> -> vector<160x4xf32>
    %27 = vector.extract_strided_slice %9 {offsets = [1, 0, 0], sizes = [1, 16, 4], strides = [1, 1, 1]} : vector<2x16x4xbf16> to vector<1x16x4xbf16>
    %28 = vector.extract_strided_slice %15 {offsets = [0, 0, 0], sizes = [1, 16, 4], strides = [1, 1, 1]} : vector<2x16x4xbf16> to vector<1x16x4xbf16>
    %29 = tpu.concatenate %27, %3, %28 in 0 : vector<1x16x4xbf16>, vector<8x16x4xbf16>, vector<1x16x4xbf16> -> vector<10x16x4xbf16>
    %cst_19 = arith.constant 0.000000e+00 : bf16
    %30 = vector.broadcast %cst_19 : bf16 to vector<10x1x4xbf16>
    %31 = vector.extract_strided_slice %29 {offsets = [0, 0, 0], sizes = [10, 15, 4], strides = [1, 1, 1]} : vector<10x16x4xbf16> to vector<10x15x4xbf16>
    %32 = tpu.concatenate %30, %31 in 1 : vector<10x1x4xbf16>, vector<10x15x4xbf16> -> vector<10x16x4xbf16>
    %33 = vector.extract_strided_slice %29 {offsets = [0, 1, 0], sizes = [10, 15, 4], strides = [1, 1, 1]} : vector<10x16x4xbf16> to vector<10x15x4xbf16>
    %34 = tpu.concatenate %33, %30 in 1 : vector<10x15x4xbf16>, vector<10x1x4xbf16> -> vector<10x16x4xbf16>
    %35 = tpu.concatenate %32, %29, %34 in 2 : vector<10x16x4xbf16>, vector<10x16x4xbf16>, vector<10x16x4xbf16> -> vector<10x16x12xbf16>
    %36 = vector.shape_cast %35 : vector<10x16x12xbf16> to vector<160x12xbf16>
    %c1 = arith.constant 1 : index
    %c0_20 = arith.constant 0 : index
    %c0_21 = arith.constant 0 : index
    %37 = vector.load %arg5[%c1, %c0_20, %c0_21] : memref<3x12x4xbf16, #tpu.memory_space<vmem>>, vector<1x12x4xbf16>
    %38 = vector.shape_cast %37 : vector<1x12x4xbf16> to vector<12x4xbf16>
    %cst_22 = arith.constant dense<0.000000e+00> : vector<160x4xf32>
    %39 = tpu.matmul %36, %38, %cst_22 {dimension_numbers = #tpu.dot_dimension_numbers<[1], [0], [0], [1], [0, 0, 1, 1], [], []>} : vector<160x12xbf16>, vector<12x4xbf16>, vector<160x4xf32> -> vector<160x4xf32>
    %40 = arith.addf %26, %39 : vector<160x4xf32>
    %41 = tpu.concatenate %3, %15 in 0 : vector<8x16x4xbf16>, vector<2x16x4xbf16> -> vector<10x16x4xbf16>
    %cst_23 = arith.constant 0.000000e+00 : bf16
    %42 = vector.broadcast %cst_23 : bf16 to vector<10x1x4xbf16>
    %43 = vector.extract_strided_slice %41 {offsets = [0, 0, 0], sizes = [10, 15, 4], strides = [1, 1, 1]} : vector<10x16x4xbf16> to vector<10x15x4xbf16>
    %44 = tpu.concatenate %42, %43 in 1 : vector<10x1x4xbf16>, vector<10x15x4xbf16> -> vector<10x16x4xbf16>
    %45 = vector.extract_strided_slice %41 {offsets = [0, 1, 0], sizes = [10, 15, 4], strides = [1, 1, 1]} : vector<10x16x4xbf16> to vector<10x15x4xbf16>
    %46 = tpu.concatenate %45, %42 in 1 : vector<10x15x4xbf16>, vector<10x1x4xbf16> -> vector<10x16x4xbf16>
    %47 = tpu.concatenate %44, %41, %46 in 2 : vector<10x16x4xbf16>, vector<10x16x4xbf16>, vector<10x16x4xbf16> -> vector<10x16x12xbf16>
    %48 = vector.shape_cast %47 : vector<10x16x12xbf16> to vector<160x12xbf16>
    %c2 = arith.constant 2 : index
    %c0_24 = arith.constant 0 : index
    %c0_25 = arith.constant 0 : index
    %49 = vector.load %arg5[%c2, %c0_24, %c0_25] : memref<3x12x4xbf16, #tpu.memory_space<vmem>>, vector<1x12x4xbf16>
    %50 = vector.shape_cast %49 : vector<1x12x4xbf16> to vector<12x4xbf16>
    %cst_26 = arith.constant dense<0.000000e+00> : vector<160x4xf32>
    %51 = tpu.matmul %48, %50, %cst_26 {dimension_numbers = #tpu.dot_dimension_numbers<[1], [0], [0], [1], [0, 0, 1, 1], [], []>} : vector<160x12xbf16>, vector<12x4xbf16>, vector<160x4xf32> -> vector<160x4xf32>
    %52 = arith.addf %40, %51 : vector<160x4xf32>
    %c0_27 = arith.constant 0 : index
    %c0_28 = arith.constant 0 : index
    %53 = vector.load %arg7[%c0_27, %c0_28] : memref<1x4xf32, #tpu.memory_space<vmem>>, vector<1x4xf32>
    %54 = vector.broadcast %53 : vector<1x4xf32> to vector<160x4xf32>
    %55 = arith.addf %52, %54 : vector<160x4xf32>
    %cst_29 = arith.constant 0.000000e+00 : f32
    %56 = vector.broadcast %cst_29 : f32 to vector<160x4xf32>
    %57 = arith.cmpf ogt, %55, %56 : vector<160x4xf32>
    %58 = vector.broadcast %0 : f32 to vector<160x4xf32>
    %59 = arith.mulf %58, %55 : vector<160x4xf32>
    %60 = arith.select %57, %55, %59 : vector<160x4xi1>, vector<160x4xf32>
    %61 = arith.truncf %60 : vector<160x4xf32> to vector<160x4xbf16>
    %62 = vector.shape_cast %61 : vector<160x4xbf16> to vector<10x16x4xbf16>
    %63 = tpu.iota {dimensions = array<i32: 0>} : vector<10x1x1xi32>
    %c0_i32_30 = arith.constant 0 : i32
    %64 = arith.cmpi sgt, %arg1, %c0_i32_30 : i32
    %c0_i32_31 = arith.constant 0 : i32
    %65 = vector.broadcast %c0_i32_31 : i32 to vector<10x1x1xi32>
    %66 = arith.cmpi ne, %63, %65 : vector<10x1x1xi32>
    %67 = vector.broadcast %64 : i1 to vector<10x1x1xi1>
    %68 = arith.ori %67, %66 : vector<10x1x1xi1>
    %c1_i32_32 = arith.constant 1 : i32
    %69 = arith.cmpi slt, %arg1, %c1_i32_32 : i32
    %c9_i32 = arith.constant 9 : i32
    %70 = vector.broadcast %c9_i32 : i32 to vector<10x1x1xi32>
    %71 = arith.cmpi ne, %63, %70 : vector<10x1x1xi32>
    %72 = vector.broadcast %69 : i1 to vector<10x1x1xi1>
    %73 = arith.ori %72, %71 : vector<10x1x1xi1>
    %74 = arith.andi %68, %73 : vector<10x1x1xi1>
    %cst_33 = arith.constant 0.000000e+00 : bf16
    %75 = vector.broadcast %cst_33 : bf16 to vector<10x16x4xbf16>
    %76 = vector.shape_cast %74 : vector<10x1x1xi1> to vector<10x1x1xi1>
    %77 = vector.broadcast %76 : vector<10x1x1xi1> to vector<10x16x4xi1>
    %78 = arith.select %77, %62, %75 : vector<10x16x4xi1>, vector<10x16x4xbf16>
    %79 = vector.extract_strided_slice %78 {offsets = [0, 0, 0], sizes = [8, 16, 4], strides = [1, 1, 1]} : vector<10x16x4xbf16> to vector<8x16x4xbf16>
    %cst_34 = arith.constant 0.000000e+00 : bf16
    %80 = vector.broadcast %cst_34 : bf16 to vector<8x1x4xbf16>
    %81 = vector.extract_strided_slice %79 {offsets = [0, 0, 0], sizes = [8, 15, 4], strides = [1, 1, 1]} : vector<8x16x4xbf16> to vector<8x15x4xbf16>
    %82 = tpu.concatenate %80, %81 in 1 : vector<8x1x4xbf16>, vector<8x15x4xbf16> -> vector<8x16x4xbf16>
    %83 = vector.extract_strided_slice %79 {offsets = [0, 1, 0], sizes = [8, 15, 4], strides = [1, 1, 1]} : vector<8x16x4xbf16> to vector<8x15x4xbf16>
    %84 = tpu.concatenate %83, %80 in 1 : vector<8x15x4xbf16>, vector<8x1x4xbf16> -> vector<8x16x4xbf16>
    %85 = tpu.concatenate %82, %79, %84 in 2 : vector<8x16x4xbf16>, vector<8x16x4xbf16>, vector<8x16x4xbf16> -> vector<8x16x12xbf16>
    %86 = vector.shape_cast %85 : vector<8x16x12xbf16> to vector<128x12xbf16>
    %c0_35 = arith.constant 0 : index
    %c0_36 = arith.constant 0 : index
    %c0_37 = arith.constant 0 : index
    %87 = vector.load %arg6[%c0_35, %c0_36, %c0_37] : memref<3x12x4xbf16, #tpu.memory_space<vmem>>, vector<1x12x4xbf16>
    %88 = vector.shape_cast %87 : vector<1x12x4xbf16> to vector<12x4xbf16>
    %cst_38 = arith.constant dense<0.000000e+00> : vector<128x4xf32>
    %89 = tpu.matmul %86, %88, %cst_38 {dimension_numbers = #tpu.dot_dimension_numbers<[1], [0], [0], [1], [0, 0, 1, 1], [], []>} : vector<128x12xbf16>, vector<12x4xbf16>, vector<128x4xf32> -> vector<128x4xf32>
    %90 = vector.extract_strided_slice %78 {offsets = [1, 0, 0], sizes = [8, 16, 4], strides = [1, 1, 1]} : vector<10x16x4xbf16> to vector<8x16x4xbf16>
    %cst_39 = arith.constant 0.000000e+00 : bf16
    %91 = vector.broadcast %cst_39 : bf16 to vector<8x1x4xbf16>
    %92 = vector.extract_strided_slice %90 {offsets = [0, 0, 0], sizes = [8, 15, 4], strides = [1, 1, 1]} : vector<8x16x4xbf16> to vector<8x15x4xbf16>
    %93 = tpu.concatenate %91, %92 in 1 : vector<8x1x4xbf16>, vector<8x15x4xbf16> -> vector<8x16x4xbf16>
    %94 = vector.extract_strided_slice %90 {offsets = [0, 1, 0], sizes = [8, 15, 4], strides = [1, 1, 1]} : vector<8x16x4xbf16> to vector<8x15x4xbf16>
    %95 = tpu.concatenate %94, %91 in 1 : vector<8x15x4xbf16>, vector<8x1x4xbf16> -> vector<8x16x4xbf16>
    %96 = tpu.concatenate %93, %90, %95 in 2 : vector<8x16x4xbf16>, vector<8x16x4xbf16>, vector<8x16x4xbf16> -> vector<8x16x12xbf16>
    %97 = vector.shape_cast %96 : vector<8x16x12xbf16> to vector<128x12xbf16>
    %c1_40 = arith.constant 1 : index
    %c0_41 = arith.constant 0 : index
    %c0_42 = arith.constant 0 : index
    %98 = vector.load %arg6[%c1_40, %c0_41, %c0_42] : memref<3x12x4xbf16, #tpu.memory_space<vmem>>, vector<1x12x4xbf16>
    %99 = vector.shape_cast %98 : vector<1x12x4xbf16> to vector<12x4xbf16>
    %cst_43 = arith.constant dense<0.000000e+00> : vector<128x4xf32>
    %100 = tpu.matmul %97, %99, %cst_43 {dimension_numbers = #tpu.dot_dimension_numbers<[1], [0], [0], [1], [0, 0, 1, 1], [], []>} : vector<128x12xbf16>, vector<12x4xbf16>, vector<128x4xf32> -> vector<128x4xf32>
    %101 = arith.addf %89, %100 : vector<128x4xf32>
    %102 = vector.extract_strided_slice %78 {offsets = [2, 0, 0], sizes = [8, 16, 4], strides = [1, 1, 1]} : vector<10x16x4xbf16> to vector<8x16x4xbf16>
    %cst_44 = arith.constant 0.000000e+00 : bf16
    %103 = vector.broadcast %cst_44 : bf16 to vector<8x1x4xbf16>
    %104 = vector.extract_strided_slice %102 {offsets = [0, 0, 0], sizes = [8, 15, 4], strides = [1, 1, 1]} : vector<8x16x4xbf16> to vector<8x15x4xbf16>
    %105 = tpu.concatenate %103, %104 in 1 : vector<8x1x4xbf16>, vector<8x15x4xbf16> -> vector<8x16x4xbf16>
    %106 = vector.extract_strided_slice %102 {offsets = [0, 1, 0], sizes = [8, 15, 4], strides = [1, 1, 1]} : vector<8x16x4xbf16> to vector<8x15x4xbf16>
    %107 = tpu.concatenate %106, %103 in 1 : vector<8x15x4xbf16>, vector<8x1x4xbf16> -> vector<8x16x4xbf16>
    %108 = tpu.concatenate %105, %102, %107 in 2 : vector<8x16x4xbf16>, vector<8x16x4xbf16>, vector<8x16x4xbf16> -> vector<8x16x12xbf16>
    %109 = vector.shape_cast %108 : vector<8x16x12xbf16> to vector<128x12xbf16>
    %c2_45 = arith.constant 2 : index
    %c0_46 = arith.constant 0 : index
    %c0_47 = arith.constant 0 : index
    %110 = vector.load %arg6[%c2_45, %c0_46, %c0_47] : memref<3x12x4xbf16, #tpu.memory_space<vmem>>, vector<1x12x4xbf16>
    %111 = vector.shape_cast %110 : vector<1x12x4xbf16> to vector<12x4xbf16>
    %cst_48 = arith.constant dense<0.000000e+00> : vector<128x4xf32>
    %112 = tpu.matmul %109, %111, %cst_48 {dimension_numbers = #tpu.dot_dimension_numbers<[1], [0], [0], [1], [0, 0, 1, 1], [], []>} : vector<128x12xbf16>, vector<12x4xbf16>, vector<128x4xf32> -> vector<128x4xf32>
    %113 = arith.addf %101, %112 : vector<128x4xf32>
    %c0_49 = arith.constant 0 : index
    %c0_50 = arith.constant 0 : index
    %114 = vector.load %arg8[%c0_49, %c0_50] : memref<1x4xf32, #tpu.memory_space<vmem>>, vector<1x4xf32>
    %115 = vector.broadcast %114 : vector<1x4xf32> to vector<128x4xf32>
    %116 = arith.addf %113, %115 : vector<128x4xf32>
    %117 = vector.shape_cast %116 : vector<128x4xf32> to vector<8x16x4xf32>
    %118 = arith.addf %2, %117 : vector<8x16x4xf32>
    %c0_51 = arith.constant 0 : index
    %c0_52 = arith.constant 0 : index
    %c0_53 = arith.constant 0 : index
    %c0_54 = arith.constant 0 : index
    %119 = vector.load %arg10[%c0_51, %c0_52, %c0_53, %c0_54] : memref<1x8x16x4xf32, #tpu.memory_space<vmem>>, vector<1x8x16x4xf32>
    %120 = vector.shape_cast %119 : vector<1x8x16x4xf32> to vector<8x16x4xf32>
    %121 = vector.shape_cast %118 : vector<8x16x4xf32> to vector<1x8x16x4xf32>
    tpu.vector_store %arg10[%c0_51, %c0_52, %c0_53, %c0_54], %121 {strides = array<i32>} : memref<1x8x16x4xf32, #tpu.memory_space<vmem>>, vector<1x8x16x4xf32>,
    return
  }
  func.func @transform_0(%arg0: i32, %arg1: i32) -> (i32, i32, i32, i32) {
    %c0_i32 = arith.constant 0 : i32
    %c0_i32_0 = arith.constant 0 : i32
    %c0_i32_1 = arith.constant 0 : i32
    return %arg0, %arg1, %c0_i32, %c0_i32_0 : i32, i32, i32, i32
  }
  func.func @transform_1(%arg0: i32, %arg1: i32) -> (i32, i32, i32, i32) {
    %c4_i32 = arith.constant 4 : i32
    %0 = arith.muli %arg1, %c4_i32 : i32
    %c1_i32 = arith.constant 1 : i32
    %1 = arith.subi %0, %c1_i32 : i32
    %c0_i32 = arith.constant 0 : i32
    %2 = arith.maxsi %1, %c0_i32 : i32
    %c0_i32_0 = arith.constant 0 : i32
    %c0_i32_1 = arith.constant 0 : i32
    %c0_i32_2 = arith.constant 0 : i32
    return %arg0, %2, %c0_i32_0, %c0_i32_1 : i32, i32, i32, i32
  }
  func.func @transform_2(%arg0: i32, %arg1: i32) -> (i32, i32, i32, i32) {
    %c4_i32 = arith.constant 4 : i32
    %0 = arith.muli %arg1, %c4_i32 : i32
    %c4_i32_0 = arith.constant 4 : i32
    %1 = arith.addi %0, %c4_i32_0 : i32
    %c7_i32 = arith.constant 7 : i32
    %2 = arith.minsi %1, %c7_i32 : i32
    %c0_i32 = arith.constant 0 : i32
    %c0_i32_1 = arith.constant 0 : i32
    %c0_i32_2 = arith.constant 0 : i32
    return %arg0, %2, %c0_i32, %c0_i32_1 : i32, i32, i32, i32
  }
  func.func @transform_3(%arg0: i32, %arg1: i32) -> (i32, i32, i32) {
    %c0_i32 = arith.constant 0 : i32
    %c0_i32_0 = arith.constant 0 : i32
    %c0_i32_1 = arith.constant 0 : i32
    %c0_i32_2 = arith.constant 0 : i32
    return %c0_i32, %c0_i32_0, %c0_i32_1 : i32, i32, i32
  }
  func.func @transform_4(%arg0: i32, %arg1: i32) -> (i32, i32, i32) {
    %c0_i32 = arith.constant 0 : i32
    %c0_i32_0 = arith.constant 0 : i32
    %c0_i32_1 = arith.constant 0 : i32
    %c0_i32_2 = arith.constant 0 : i32
    return %c0_i32, %c0_i32_0, %c0_i32_1 : i32, i32, i32
  }
  func.func @transform_5(%arg0: i32, %arg1: i32) -> (i32, i32) {
    %c0_i32 = arith.constant 0 : i32
    %c0_i32_0 = arith.constant 0 : i32
    %c0_i32_1 = arith.constant 0 : i32
    return %c0_i32, %c0_i32_0 : i32, i32
  }
  func.func @transform_6(%arg0: i32, %arg1: i32) -> (i32, i32) {
    %c0_i32 = arith.constant 0 : i32
    %c0_i32_0 = arith.constant 0 : i32
    %c0_i32_1 = arith.constant 0 : i32
    return %c0_i32, %c0_i32_0 : i32, i32
  }
  func.func @transform_7(%arg0: i32, %arg1: i32) -> (i32, i32) {
    %c0_i32 = arith.constant 0 : i32
    %c0_i32_0 = arith.constant 0 : i32
    %c0_i32_1 = arith.constant 0 : i32
    return %c0_i32, %c0_i32_0 : i32, i32
  }
  func.func @transform_8(%arg0: i32, %arg1: i32) -> (i32, i32, i32, i32) {
    %c0_i32 = arith.constant 0 : i32
    %c0_i32_0 = arith.constant 0 : i32
    %c0_i32_1 = arith.constant 0 : i32
    return %arg0, %arg1, %c0_i32, %c0_i32_0 : i32, i32, i32, i32
  }
}

</mosaic_0001>

<bundles_post_ra>
// kernel: tpu_custom_call.1
= control target key start
LH: loop header
LB: loop body
LE: loop exit
PB: predicated region body
PF: predicated region fallthrough
CT: control target
= control target key end

     0   :  { %s2700_s29 = smov 0   ;;  %s2702_s30 = smov 0   ;;  %s3409_s0 = inlined_call_operand.vmem [shape: f32[2,16,16,4], index: 0, kind: input, shape index: {}]   ;;  %s3410_s1 = inlined_call_operand.vmem [shape: f32[2,16,16,4], index: 1, kind: input, shape index: {}]   ;;  %s3411_s2 = inlined_call_operand.vmem [shape: f32[2,16,16,4], index: 2, kind: input, shape index: {}]   ;;  %s3412_s3 = inlined_call_operand.vmem [shape: bf16[3,12,4], index: 3, kind: input, shape index: {}]   ;;  %s3413_s4 = inlined_call_operand.vmem [shape: bf16[3,12,4], index: 4, kind: input, shape index: {}]   ;;  %s3414_s5 = inlined_call_operand.vmem [shape: f32[1,4], index: 5, kind: input, shape index: {}]   ;;  %s3415_s6 = inlined_call_operand.vmem [shape: f32[1,4], index: 6, kind: input, shape index: {}]   ;;  %s3416_s7 = inlined_call_operand.<no memory space> [shape: f32[1,1], index: 7, kind: input, shape index: {}]   ;;  %s3417_s8 = inlined_call_operand.vmem [shape: f32[2,16,16,4], index: 8, kind: output, shape index: {}]  }
   0x1   :  { %13 = sst [smem:[#allocation2]] %s3416_s7  ;;  %s2704_s9 = smov 0  }
   0x2   :  { %s2706_s10 = smov 0   ;;  %s2708_s11 = smov 0  }
   0x3 LB: > { %s28_s7 = sadd.s32 1, %s2640_s9  ;;  %s31_s12 = sadd.s32 1, %s2644_s10  ;;  %s2648_s11 = sphi %s2708_s11, %s19_s11   ;;  %s2644_s10 = sphi %s2706_s10, %s3430_s10   ;;  %s2640_s9 = sphi %s2704_s9, %s3429_s9   ;;  %s2636_s30 = sphi %s2702_s30, %s3428_s30   ;;  %s2632_s29 = sphi %s2700_s29, %s3427_s29  }
   0x4   : > { %p29_p0 = scmp.ge.s32.totalorder %s28_s7, 2  ;;  %p2169_p1 = scmp.ge.s32.totalorder %s2648_s11, 1 }
   0x5   : > { %p353_p2 = scmp.lt.s32.totalorder %s2648_s11, 5 }
   0x6   : > { %s3432_s7 = smov (%p29_p0, %s28_s7), 0  ;;  %s3434_s12 = smov (!%p29_p0, %s31_s12), %s2644_s10 }
   0x7   : > { %p354_p3 = pnand %p2169_p1, %p353_p2  ;;  %p33_p4 = scmp.ge.s32.totalorder %s3434_s12, 2 }
   0x8   : > { %p426_p5 = scmp.lt.s32.totalorder (!%p354_p3), %s2636_s30, 1  ;;  %s2174_s13 = sshll.u32 (!%p354_p3), %s2632_s29, 2  ;;  %v2588_v0 = vld [vmem:[%s3412_s3 + $0x8] sm:$0x3f] (!%p354_p3)   ;;  %vm842_vm0 = vcmask (!%p354_p3), 1045504   ;;  %vm662_vm1 = vcmask (!%p354_p3), 1047552  }
   0x9   : > { %s3436_s12 = smov (%p33_p4, %s3434_s12), 0  ;;  %357 = sbr.rel (%p354_p3) target bundleno = 891 (0x37b), region = 52 }
   0xa   : > { %s2175_s14 = sadd.s32 (!%p354_p3), 4294967295, %s2174_s13  ;;  %p511_p6 = scmp.gt.s32.totalorder (!%p354_p3), %s2632_s29, 0  ;;  %2515 = vmatprep.subr.msk.bf16.mxu0 (!%p354_p3), %vm842_vm0, %v2588_v0  ;;  %v844_v2 = vsel (!%p354_p3), %vm842_vm0, %v2588_v0, 0  ;;  %2516 = vmatprep.subr.msk.bf16.mxu1 (!%p354_p3), %vm842_vm0, %v2588_v0  ;;  %vm663_vm2 = vsmask.f32 (!%p354_p3), 7424  ;;  %vm619_vm4 = vcmask (!%p354_p3), 1040384  }
   0xb   : > { %p438_p7 = scmp.gt.s32.totalorder (!%p354_p3), %s2175_s14, 0  ;;  %s2170_s18 = sshll.u32 (!%p354_p3), %s2632_s29, 3  ;;  %2322 = vmatpush3.bf16.msra.mxu0 (!%p354_p3), %v844_v2  ;;  %2442 = vmatpush3.bf16.msra.mxu1 (!%p354_p3), %v844_v2  ;;  %v2763_v5 = vld [vmem:[%s3412_s3] sm:$0x3f] (!%p354_p3)   ;;  %vm2774_vm3 = vmand (!%p354_p3), %vm662_vm1, %vm663_vm2  ;;  %vm620_vm5 = vsmask.f32 (!%p354_p3), 256 }
   0xc   : > { %p428_p9 = scmp.lt.s32.totalorder (!%p354_p3), %s2170_s18, 15  ;;  %s456_s28 = sadd.s32 (!%p354_p3), 4, %s2174_s13  ;;  %2517 = vmatprep.subr.msk.bf16.mxu0 (!%p354_p3), %vm842_vm0, %v2763_v5  ;;  %vm2943_vm6 = vmand (!%p354_p3), %vm619_vm4, %vm620_vm5  ;;  %vm735_vm7 = vcmask (!%p354_p3), 31744   ;;  %vm766_vm8 = vcmask (!%p354_p3), 64512   ;;  %vm821_vm9 = vcmask (!%p354_p3), 97280  }
   0xd   : > { %p457_p10 = scmp.lt.s32.totalorder (!%p354_p3), %s456_s28, 7  ;;  %s2651_s26 = smov (!%p354_p3), 8  }
   0xe   : > { %p525_p12 = scmp.lt.s32.totalorder (!%p354_p3), %s2632_s29, 1 }
  0x10   : > { %s3438_s30 = smov (!%p426_p5, %s2636_s30), 1  ;;  %s3440_s14 = smov (!%p438_p7, %s2175_s14), 0 }
  0x11   : > { %s2734_s15 = scalar_select %p511_p6, 1, 0 }
  0x12   : > { %s2176_s16 = sshll.u32 %s3440_s14, 1  ;;  %s2736_s17 = sshll.u32 %s3438_s30, 5 }
  0x13   : > { %p443_p8 = scmp.lt.s32.totalorder %s2176_s16, 15  ;;  %s3444_s18 = smov (!%p428_p9, %s2170_s18), 15 }
  0x14   : > { %s2739_s19 = scalar_select %p511_p6, 255, 0 }
  0x15   : > { %s3442_s16 = smov (!%p443_p8, %s2176_s16), 15  ;;  %s2171_s30 = sshll.u32 %s3444_s18, 1 }
  0x16   : > { %s2177_s20 = sshll.u32 %s3442_s16, 1  ;;  %s2758_s14 = sadd.s32 %s2736_s17, %s2171_s30 }
  0x17   : > { %s447_s21 = sadd.s32 %s2177_s20, %s2736_s17  ;;  %s2650_s20 = smov 4  }
  0x18   : > { %s2179_s22 = sshll.u32 %s447_s21, 3  ;;  %s2173_s21 = sshll.u32 %s2758_s14, 3 }
  0x19   : > { %s2748_s27 = scalar_lea.vmem %s3410_s1, %s2179_s22  ;;  %s2772_s23 = scalar_lea.vmem %s3409_s0, %s2173_s21 }
  0x1a   : > { %v2566_v1 = vld [vmem:[%s2748_s27 + $0x10] sm:%s2739_s19]  ;;  %v2569_v3 = vld [vmem:[%s2748_s27 + $0x18] sm:%s2739_s19]  ;;  %s3446_s28 = smov (!%p457_p10, %s456_s28), 7  ;;  %s3329_s18 = scalar_lea.vmem %s3417_s8, %s2173_s21 }
  0x1b   : > { %v524_v4 = vpack.c.bf16 %v2569_v3, %v2566_v1  ;;  %v487_v11 = vld [vmem:[%s2772_s23] sm:$0xff]  ;;  %v488_v12 = vld [vmem:[%s2772_s23 + $0x8] sm:$0xff]  ;;  %v489_v13 = vld [vmem:[%s2772_s23 + $0x10] sm:$0xff]  ;;  %s2181_s24 = sshll.u32 %s3446_s28, 1 }
  0x1c   : > { %v2786_v14 = vpack.c.bf16 %v488_v12, %v487_v11  ;;  %v490_v15 = vld [vmem:[%s2772_s23 + $0x18] sm:$0xff]  ;;  %v491_v16 = vld [vmem:[%s2772_s23 + $0x20] sm:$0xff]  ;;  %v492_v17 = vld [vmem:[%s2772_s23 + $0x28] sm:$0xff]  ;;  %p2806_p11 = scmp.lt.s32.totalorder %s2181_s24, 15 }
  0x1d   : > { %687 = vrot.lane.b32.xlu0 %v524_v4, %s2650_s20  ;;  %v547_v6 = vshrl.u32 %v524_v4, 16  ;;  %v550_v7 = vshll.u32 %v524_v4, 16  ;;  %v2791_v19 = vpack.c.bf16 %v490_v15, %v489_v13  ;;  %v2793_v20 = vpack.c.bf16 %v492_v17, %v491_v16  ;;  %v493_v21 = vld [vmem:[%s2772_s23 + $0x30] sm:$0xff]  ;;  %v494_v22 = vld [vmem:[%s2772_s23 + $0x38] sm:$0xff]  ;;  %v495_v30 = vld [vmem:[%s2772_s23 + $0x40] sm:$0xff] }
  0x1e   : > { %v554_v24 = vshrl.u32 %v2786_v14, 16  ;;  %v557_v25 = vshll.u32 %v2786_v14, 16  ;;  %v2804_v26 = vpack.c.bf16 %v494_v22, %v493_v21  ;;  %v496_v31 = vld [vmem:[%s2772_s23 + $0x48] sm:$0xff]  ;;  %v497_v34 = vld [vmem:[%s2772_s23 + $0x50] sm:$0xff]  ;;  %v498_v35 = vld [vmem:[%s2772_s23 + $0x58] sm:$0xff]  ;;  %s3448_s24 = smov (!%p2806_p11, %s2181_s24), 15 }
  0x1f   : > { %v634_v9 = vrot.slane %v550_v7, 1  ;;  %v549_v10 = vrot.slane %v547_v6, 7  ;;  %v561_v28 = vshrl.u32 %v2791_v19, 16  ;;  %v564_v29 = vshll.u32 %v2791_v19, 16  ;;  %s2839_s28 = scalar_select %p525_p12, 1, 0 }
  0x20   : > { %v636_v32 = vrot.slane %v557_v25, 1  ;;  %v571_v33 = vshll.u32 %v2793_v20, 16  ;;  %v578_v37 = vshll.u32 %v2804_v26, 16  ;;  %v568_v39 = vshrl.u32 %v2793_v20, 16  ;;  %v499_v50 = vld [vmem:[%s2772_s23 + $0x60] sm:$0xff]  ;;  %v500_v51 = vld [vmem:[%s2772_s23 + $0x68] sm:$0xff] }
  0x21   : > { %v635_v18 = vor.u32 %v634_v9, %v547_v6  ;;  %v2798_v23 = vor.u32 %v550_v7, %v549_v10  ;;  %689 = vrot.lane.b32.xlu0 %v2786_v14, %s2650_s20  ;;  %v638_v36 = vrot.slane %v564_v29, 1  ;;  %v507_v41 = vpack.c.bf16 %v496_v31, %v495_v30  ;;  %s2182_s30 = sshll.u32 %s3448_s24, 1  ;;  %v2572_v54 = vld [vmem:[%s2748_s27] sm:%s2739_s19]  ;;  %v501_v16 = vld [vmem:[%s2772_s23 + $0x70] sm:$0xff]  ;;  %s486_s24 = sld [smem:[#allocation2]] }
  0x22   : > { %v637_v38 = vor.u32 %v636_v32, %v554_v24  ;;  %v640_v40 = vrot.slane %v571_v33, 1  ;;  %v575_v43 = vshrl.u32 %v2804_v26, 16  ;;  %v642_v44 = vrot.slane %v578_v37, 1  ;;  %v2575_v55 = vld [vmem:[%s2748_s27 + $0x8] sm:%s2739_s19]  ;;  %s2851_s16 = sadd.s32 %s2182_s30, %s2736_s17  ;;  %v502_v17 = vld [vmem:[%s2772_s23 + $0x78] sm:$0xff] }
  0x23   : > { %v666_v27 = vsel %vm2774_vm3, %v635_v18, 0  ;;  %v639_v42 = vor.u32 %v638_v36, %v561_v28  ;;  %v508_v45 = vpack.c.bf16 %v498_v35, %v497_v34  ;;  %v585_v49 = vshll.u32 %v507_v41, 16  ;;  %s2184_s17 = sshll.u32 %s2851_s16, 3 }
  0x24   : > { %717 = vrot.lane.b32.xlu1 %v666_v27, %s2651_s26  ;;  %v667_v46 = vsel %vm2774_vm3, %v637_v38, 0  ;;  %v641_v48 = vor.u32 %v640_v40, %v568_v39  ;;  %v643_v52 = vor.u32 %v642_v44, %v575_v43  ;;  %v556_v56 = vrot.slane %v554_v24, 7  ;;  %s2863_s19 = scalar_select %p525_p12, 255, 0 }
  0x25   : > { %691 = vrot.lane.b32.xlu0 %v2791_v19, %s2650_s20  ;;  %v668_v47 = vsel %vm2774_vm3, %v639_v42, 0  ;;  %v592_v53 = vshll.u32 %v508_v45, 16  ;;  %v563_v57 = vrot.slane %v561_v28, 7  ;;  %v509_v58 = vpack.c.bf16 %v500_v51, %v499_v50  ;;  %s468_s13 = scalar_lea.vmem %s3411_s2, %s2184_s17 }
  0x26   : > { %v570_v59 = vrot.slane %v568_v39, 7  ;;  %v669_v60 = vsel %vm2774_vm3, %v641_v48, 0  ;;  %v582_v61 = vshrl.u32 %v507_v41, 16  ;;  %v644_v62 = vrot.slane %v585_v49, 1  ;;  %v2578_v31 = vld [vmem:[%s468_s13] sm:%s2863_s19]  ;;  %v2587_v38 = vld [vmem:[%s468_s13 + $0x18] sm:%s2863_s19] }
  0x27   : > { %v670_v63 = vsel %vm2774_vm3, %v643_v52, 0  ;;  %v589_v0 = vshrl.u32 %v508_v45, 16  ;;  %v646_v1 = vrot.slane %v592_v53, 1  ;;  %v523_v2 = vpack.c.bf16 %v2575_v55, %v2572_v54 }
  0x28   : > { %719 = vrot.lane.b32.xlu1 %v667_v46, %s2651_s26  ;;  %v577_v3 = vrot.slane %v575_v43, 7  ;;  %v584_v4 = vrot.slane %v582_v61, 7  ;;  %v596_v6 = vshrl.u32 %v509_v58, 16  ;;  %v599_v7 = vshll.u32 %v509_v58, 16 }
  0x29   : > { %721 = vrot.lane.b32.xlu0 %v668_v47, %s2651_s26  ;;  %v540_v9 = vshrl.u32 %v523_v2, 16  ;;  %v2867_v10 = vor.u32 %v557_v25, %v556_v56  ;;  %v2869_v11 = vor.u32 %v564_v29, %v563_v57  ;;  %v645_v12 = vor.u32 %v644_v62, %v582_v61 }
  0x2a   : > { %v591_v13 = vrot.slane %v589_v0, 7  ;;  %v598_v15 = vrot.slane %v596_v6, 7  ;;  %v2874_v18 = vor.u32 %v571_v33, %v570_v59  ;;  %v647_v19 = vor.u32 %v646_v1, %v589_v0 }
  0x2b   : > { %v648_v14 = vrot.slane %v599_v7, 1  ;;  %v543_v21 = vshll.u32 %v523_v2, 16  ;;  %v510_v22 = vpack.c.bf16 %v502_v17, %v501_v16  ;;  %v2882_v24 = vor.u32 %v578_v37, %v577_v3  ;;  %v2584_v37 = vld [vmem:[%s468_s13 + $0x10] sm:%s2863_s19] }
  0x2c   : > { %693 = vrot.lane.b32.xlu1 %v2793_v20, %s2650_s20  ;;  %v542_v20 = vrot.slane %v540_v9, 7  ;;  %v671_v25 = vsel %vm2774_vm3, %v645_v12, 0  ;;  %v2887_v27 = vor.u32 %v585_v49, %v584_v4  ;;  %v2889_v28 = vor.u32 %v592_v53, %v591_v13 }
  0x2d   : > { %695 = vrot.lane.b32.xlu0 %v2804_v26, %s2650_s20  ;;  %v2891_v29 = vor.u32 %v599_v7, %v598_v15  ;;  %v672_v30 = vsel %vm2774_vm3, %v647_v19, 0  ;;  %v2581_v26 = vld [vmem:[%s468_s13 + $0x8] sm:%s2863_s19]  ;;  %v649_v33 = vor.u32 %v648_v14, %v596_v6  ;;  %v632_v34 = vrot.slane %v543_v21, 1 }
  0x2e   : > { %v2897_v32 = vor.u32 %v543_v21, %v542_v20  ;;  %v606_v35 = vshll.u32 %v510_v22, 16  ;;  %v2901_v36 = vpack.c.bf16 %v2581_v26, %v2578_v31  ;;  %v603_v40 = vshrl.u32 %v510_v22, 16 }
  0x2f   : > { %v673_v39 = vsel %vm2774_vm3, %v649_v33, 0  ;;  %v2910_v44 = vpack.c.bf16 %v2587_v38, %v2584_v37  ;;  %v623_v61 = vsel %vm2943_vm6, 0, %v2798_v23  ;;  %v624_v1 = vsel %vm2943_vm6, 0, %v2867_v10  ;;  %v2590_v10 = vld [vmem:[%s3412_s3 + $0x10] sm:$0x3f]  }
  0x30   : > { %723 = vrot.lane.b32.xlu1 %v669_v60, %s2651_s26  ;;  %v650_v42 = vrot.slane %v606_v35, 1  ;;  %v793_v43 = vshll.u32 %v2901_v36, 16  ;;  %v605_v57 = vrot.slane %v603_v40, 7  ;;  %v625_v3 = vsel %vm2943_vm6, 0, %v2869_v11 }
  0x31   : > { %725 = vrot.lane.b32.xlu0 %v670_v63, %s2651_s26  ;;  %v1086_v49 = vshll.u32 %v2910_v44, 16  ;;  %v1083_v52 = vshrl.u32 %v2910_v44, 16  ;;  %v626_v16 = vsel %vm2943_vm6, 0, %v2874_v18  ;;  %v629_v18 = vsel %vm2943_vm6, 0, %v2889_v28 }
  0x32   : > { %v651_v47 = vor.u32 %v650_v42, %v603_v40  ;;  %v798_v48 = vrot.slane %v793_v43, 1  ;;  %v622_v40 = vsel %vm2943_vm6, 0, %v2897_v32 }
  0x33   : > { %v1091_v53 = vrot.slane %v1086_v49, 1 }
  0x34   : > { %697 = vrot.lane.b32.xlu1 %v507_v41, %s2650_s20  ;;  %v633_v41 = vor.u32 %v632_v34, %v540_v9  ;;  %v674_v50 = vsel %vm2774_vm3, %v651_v47, 0  ;;  %v967_v9 = vsel %vm842_vm0, %v2763_v5, 0  ;;  %v627_v5 = vsel %vm2943_vm6, 0, %v2882_v24 }
  0x35   : > { %699 = vrot.lane.b32.xlu0 %v508_v45, %s2650_s20  ;;  %v790_v45 = vshrl.u32 %v2901_v36, 16  ;;  %v1092_v55 = vor.u32 %v1091_v53, %v1083_v52 }
  0x36   : > { %v665_v46 = vsel %vm2774_vm3, %v633_v41, 0 }
  0x37   : > { %v799_v51 = vor.u32 %v798_v48, %v790_v45  ;;  %v1094_v56 = vsel %vm2774_vm3, %v1092_v55, 0 }
  0x38   : > { %727 = vrot.lane.b32.xlu1 %v671_v25, %s2651_s26 }
  0x39   : > { %729 = vrot.lane.b32.xlu0 %v672_v30, %s2651_s26  ;;  %v801_v54 = vsel %vm2774_vm3, %v799_v51, 0  ;;  %v628_v30 = vsel %vm2943_vm6, 0, %v2887_v27  ;;  %v630_v27 = vsel %vm2943_vm6, 0, %v2891_v29 }
  0x3c   : > { %701 = vrot.lane.b32.xlu1 %v509_v58, %s2650_s20  ;;  %v2941_v58 = vor.u32 %v606_v35, %v605_v57 }
  0x3d   : > { %685 = vrot.lane.b32.xlu0 %v523_v2, %s2650_s20 }
  0x3e   : > { %v631_v29 = vsel %vm2943_vm6, 0, %v2941_v58 }
  0x40   : > { %731 = vrot.lane.b32.xlu1 %v673_v39, %s2651_s26  ;;  %v792_v39 = vrot.slane %v790_v45, 7 }
  0x41   : > { %703 = vrot.lane.b32.xlu0 %v510_v22, %s2650_s20 }
  0x42   : > { %v795_v45 = vor.u32 %v793_v43, %v792_v39 }
  0x44   : > { %715 = vrot.lane.b32.xlu1 %v665_v46, %s2651_s26 }
  0x45   : > { %803 = vrot.lane.b32.xlu0 %v2901_v36, %s2650_s20 }
  0x48   : > { %733 = vrot.lane.b32.xlu1 %v674_v50, %s2651_s26 }
  0x49   : > { %1096 = vrot.lane.b32.xlu0 %v2910_v44, %s2650_s20 }
  0x4c   : > { %806 = vrot.lane.b32.xlu1 %v801_v54, %s2651_s26  ;;  %v797_v54 = vsel %vm2943_vm6, 0, %v795_v45 }
  0x50   : > { %1099 = vrot.lane.b32.xlu1 %v1094_v56, %s2651_s26  ;;  %v1117_v56 = vsel %vm842_vm0, %v2590_v10, 0 }
  0x8f   : > { %v688_v60 = vpop.permute.xlu0 %687 }
  0x90   : > { %v741_v62 = vsel %vm735_vm7, %v623_v61, %v688_v60  ;;  %v1085_v61 = vrot.slane %v1083_v52, 7 }
  0x93   : > { %v690_v63 = vpop.permute.xlu0 %689 }
  0x94   : > { %v744_v4 = vsel %vm735_vm7, %v624_v1, %v690_v63 }
  0x96   : > { %v718_v0 = vpop.permute.xlu1 %717 }
  0x97   : > { %v2955_v2 = vsel %vm766_vm8, %v741_v62, %v718_v0  ;;  %v692_v23 = vpop.permute.xlu0 %691  ;;  %v1088_v62 = vor.u32 %v1086_v49, %v1085_v61 }
  0x98   : > { %2323 = vmatprep.mubr.msk.bf16.mxu0 %vm821_vm9, %v2955_v2  ;;  %v747_v6 = vsel %vm735_vm7, %v625_v3, %v692_v23 }
  0x99   : > { %v1090_v63 = vsel %vm2943_vm6, 0, %v1088_v62 }
  0x9a   : > { %v720_v7 = vpop.permute.xlu1 %719 }
  0x9b   : > { %v2970_v12 = vsel %vm766_vm8, %v744_v4, %v720_v7  ;;  %v722_v11 = vpop.permute.xlu0 %721  ;;  %v3075_v4 = vld [vmem:[%s3414_s5] ss:$0 sm:$0xff]  ;;  %v3077_v7 = vstv %s486_s24 }
  0x9c   : > { %2324 = vmatmul.mubr.msk.bf16.vlgmr.msra.gmra.mrb[0].mxu0 %vm821_vm9, %v2970_v12  ;;  %v2975_v13 = vsel %vm766_vm8, %v747_v6, %v722_v11 }
  0x9d   : > { %2344 = vmatpush3.bf16.msra.mxu0 %v967_v9  ;;  %2327 = vmatprep.mubr.msk.bf16.mxu0 %vm821_vm9, %v2975_v13 }
  0x9e   : > { %v694_v15 = vpop.permute.xlu1 %693  ;;  %2518 = vmatprep.subr.msk.bf16.mxu0 %vm842_vm0, %v2590_v10 }
  0x9f   : > { %v696_v17 = vpop.permute.xlu0 %695  ;;  %v750_v20 = vsel %vm735_vm7, %v626_v16, %v694_v15  ;;  %v517_v16 = vstv %s2734_s15 }
  0xa0   : > { %v753_v19 = vsel %vm735_vm7, %v627_v5, %v696_v17  ;;  %vm3091_vm14 = vcmp.eq.s32.totalorder %v517_v16, 1 }
  0xa2   : > { %v724_v14 = vpop.permute.xlu1 %723 }
  0xa3   : > { %v776_v21 = vsel %vm766_vm8, %v750_v20, %v724_v14  ;;  %v726_v22 = vpop.permute.xlu0 %725 }
  0xa4   : > { %2328 = vmatmul.mubr.msk.bf16.gmra.mrb[4].mxu0 %vm821_vm9, %v776_v21  ;;  %v778_v25 = vsel %vm766_vm8, %v753_v19, %v726_v22 }
  0xa5   : > { %2331 = vmatprep.mubr.msk.bf16.mxu0 %vm821_vm9, %v778_v25 }
  0xa6   : > { %v698_v24 = vpop.permute.xlu1 %697 }
  0xa7   : > { %v700_v31 = vpop.permute.xlu0 %699  ;;  %v756_v33 = vsel %vm735_vm7, %v628_v30, %v698_v24 }
  0xa8   : > { %v759_v26 = vsel %vm735_vm7, %v629_v18, %v700_v31 }
  0xaa   : > { %v728_v34 = vpop.permute.xlu1 %727 }
  0xab   : > { %v780_v35 = vsel %vm766_vm8, %v756_v33, %v728_v34  ;;  %v730_v37 = vpop.permute.xlu0 %729 }
  0xac   : > { %2332 = vmatmul.mubr.msk.bf16.gmra.mrb[8].mxu0 %vm821_vm9, %v780_v35  ;;  %v782_v38 = vsel %vm766_vm8, %v759_v26, %v730_v37 }
  0xad   : > { %2335 = vmatprep.mubr.msk.bf16.mxu0 %vm821_vm9, %v782_v38 }
  0xae   : > { %v702_v28 = vpop.permute.xlu1 %701 }
  0xaf   : > { %v686_v41 = vpop.permute.xlu0 %685  ;;  %v762_v42 = vsel %vm735_vm7, %v630_v27, %v702_v28 }
  0xb0   : > { %v738_v48 = vsel %vm735_vm7, %v622_v40, %v686_v41 }
  0xb2   : > { %v732_v46 = vpop.permute.xlu1 %731 }
  0xb3   : > { %v784_v47 = vsel %vm766_vm8, %v762_v42, %v732_v46  ;;  %v704_v50 = vpop.permute.xlu0 %703 }
  0xb4   : > { %2336 = vmatmul.mubr.msk.bf16.gmra.mrb[12].mxu0 %vm821_vm9, %v784_v47  ;;  %v765_v53 = vsel %vm735_vm7, %v631_v29, %v704_v50 }
  0xb6   : > { %v716_v51 = vpop.permute.xlu1 %715 }
  0xb7   : > { %v768_v32 = vsel %vm766_vm8, %v738_v48, %v716_v51  ;;  %v804_v55 = vpop.permute.xlu0 %803 }
  0xb8   : > { %2345 = vmatprep.mubr.msk.bf16.mxu0 %vm821_vm9, %v768_v32  ;;  %v810_v36 = vsel %vm735_vm7, %v797_v54, %v804_v55 }
  0xba   : > { %v734_v57 = vpop.permute.xlu1 %733 }
  0xbb   : > { %v786_v58 = vsel %vm766_vm8, %v765_v53, %v734_v57  ;;  %v1097_v0 = vpop.permute.xlu0 %1096 }
  0xbc   : > { %2346 = vmatmul.mubr.msk.bf16.vlgmr.msra.gmra.mrb[0].mxu0 %vm821_vm9, %v2955_v2  ;;  %2339 = vmatprep.mubr.msk.bf16.mxu1 %vm821_vm9, %v786_v58  ;;  %v1103_v1 = vsel %vm735_vm7, %v1090_v63, %v1097_v0  ;;  %v3121_v63 = vld [vmem:[%s3413_s4] sm:$0x3f]  }
  0xbd   : > { %2366 = vmatpush3.bf16.msra.mxu0 %v1117_v56  ;;  %2349 = vmatprep.mubr.msk.bf16.mxu0 %vm821_vm9, %v2970_v12 }
  0xbe   : > { %v807_v43 = vpop.permute.xlu1 %806 }
  0xbf   : > { %v812_v60 = vsel %vm766_vm8, %v810_v36, %v807_v43 }
  0xc0   : > { %2340 = vmatmul.mubr.msk.bf16.vlgmr.msra.gmra.mrb[0].mxu1 %vm821_vm9, %v812_v60 }
  0xc2   : > { %v1100_v2 = vpop.permute.xlu1 %1099 }
  0xc3   : > { %v1105_v52 = vsel %vm766_vm8, %v1103_v1, %v1100_v2 }
  0xc4   : > { %2350 = vmatmul.mubr.msk.bf16.gmra.mrb[4].mxu0 %vm821_vm9, %v2975_v13 }
  0xc5   : > { %2353 = vmatprep.mubr.msk.bf16.mxu0 %vm821_vm9, %v776_v21 }
  0xcc   : > { %2354 = vmatmul.mubr.msk.bf16.gmra.mrb[8].mxu0 %vm821_vm9, %v778_v25 }
  0xcd   : > { %2357 = vmatprep.mubr.msk.bf16.mxu0 %vm821_vm9, %v780_v35 }
  0xd4   : > { %2358 = vmatmul.mubr.msk.bf16.gmra.mrb[12].mxu0 %vm821_vm9, %v782_v38 }
  0xd5   : > { %2361 = vmatprep.mubr.msk.bf16.mxu0 %vm821_vm9, %v784_v47 }
  0xdc   : > { %2362 = vmatmul.mubr.msk.bf16.gmra.mrb[16].mxu0 %vm821_vm9, %v786_v58 }
  0xdd   : > { %2367 = vmatprep.mubr.msk.bf16.mxu0 %vm821_vm9, %v2970_v12 }
  0xe4   : > { %2368 = vmatmul.mubr.msk.bf16.vlgmr.msra.gmra.mrb[0].mxu0 %vm821_vm9, %v2975_v13 }
  0xe5   : > { %2371 = vmatprep.mubr.msk.bf16.mxu0 %vm821_vm9, %v776_v21  ;;  %v2591_v21 = vld [vmem:[%s3413_s4 + $0x8] sm:$0x3f]  }
  0xe6   : > { %2519 = vmatprep.subr.msk.bf16.mxu1 %vm842_vm0, %v2591_v21  ;;  %v1607_v33 = vsel %vm842_vm0, %v2591_v21, 0 }
  0xe7   : > { %2388 = vmatpush3.bf16.msra.mxu1 %v1607_v33 }
  0xe8   : > { %2520 = vmatprep.subr.msk.bf16.mxu1 %vm842_vm0, %v3121_v63 }
  0xec   : > { %2372 = vmatmul.mubr.msk.bf16.gmra.mrb[4].mxu0 %vm821_vm9, %v778_v25 }
  0xed   : > { %2375 = vmatprep.mubr.msk.bf16.mxu0 %vm821_vm9, %v780_v35 }
  0xf4   : > { %2376 = vmatmul.mubr.msk.bf16.gmra.mrb[8].mxu0 %vm821_vm9, %v782_v38 }
  0xf5   : > { %2379 = vmatprep.mubr.msk.bf16.mxu0 %vm821_vm9, %v784_v47 }
  0xfc   : > { %2380 = vmatmul.mubr.msk.bf16.gmra.mrb[12].mxu0 %vm821_vm9, %v786_v58 }
  0xfd   : > { %2383 = vmatprep.mubr.msk.bf16.mxu0 %vm821_vm9, %v812_v60 }
 0x104   : > { %2384 = vmatmul.mubr.msk.bf16.gmra.mrb[16].mxu0 %vm821_vm9, %v1105_v52 }
 0x193   : > { %v3064_v3 = vpop.f32.mrb[0].mxu1 }
 0x194   : > { %v3066_v44 = vpop.f32.mrb[1].mxu1 }
 0x195   : > { %v3068_v49 = vpop.f32.mrb[2].mxu1 }
 0x196   : > { %v3070_v23 = vpop.f32.mrb[3].mxu1 }
 0x1b7   : > { %v2369_v6 = vpop.f32.mrb[0].mxu0 }
 0x1b8   : > { %v1261_v9 = vadd.f32 %v2369_v6, %v3075_v4  ;;  %v1153_v10 = vpop.f32.mrb[1].mxu0 }
 0x1b9   : > { %v1259_v12 = vadd.f32 %v3075_v4, %v1153_v10  ;;  %v2370_v11 = vpop.f32.mrb[2].mxu0 }
 0x1ba   : > { %v1302_v13 = vmul.f32 %v3077_v7, %v1261_v9  ;;  %v1262_v15 = vadd.f32 %v2370_v11, %v3075_v4  ;;  %v1156_v5 = vpop.f32.mrb[3].mxu0  ;;  %vm1281_vm10 = vcmp.gt.f32.partialorder %v1261_v9, 0.0 }
 0x1bb   : > { %v1300_v17 = vmul.f32 %v3077_v7, %v1259_v12  ;;  %v1260_v19 = vadd.f32 %v3075_v4, %v1156_v5  ;;  %vm1279_vm11 = vcmp.gt.f32.partialorder %v1259_v12, 0.0 }
 0x1bc   : > { %vm1282_vm12 = vcmp.gt.f32.partialorder %v1262_v15, 0.0  ;;  %v1303_v20 = vmul.f32 %v3077_v7, %v1262_v15  ;;  %v1322_v25 = vsel %vm1281_vm10, %v1261_v9, %v1302_v13 }
 0x1bd   : > { %vm1280_vm13 = vcmp.gt.f32.partialorder %v1260_v19, 0.0  ;;  %v1301_v14 = vmul.f32 %v3077_v7, %v1260_v19  ;;  %v1320_v31 = vsel %vm1279_vm11, %v1259_v12, %v1300_v17 }
 0x1be   : > { %v1323_v24 = vsel %vm1282_vm12, %v1262_v15, %v1303_v20 }
 0x1bf   : > { %v2373_v18 = vpop.f32.mrb[4].mxu0  ;;  %v1341_v30 = vpack.c.bf16 %v1323_v24, %v1322_v25  ;;  %v1321_v26 = vsel %vm1280_vm13, %v1260_v19, %v1301_v14 }
 0x1c0   : > { %v1265_v34 = vadd.f32 %v2373_v18, %v3075_v4  ;;  %v1169_v35 = vpop.f32.mrb[5].mxu0  ;;  %v1340_v37 = vpack.c.bf16 %v1321_v26, %v1320_v31 }
 0x1c1   : > { %v1263_v38 = vadd.f32 %v3075_v4, %v1169_v35  ;;  %1478 = vrot.lane.b32.xlu0 %v1341_v30, %s2650_s20  ;;  %v2374_v28 = vpop.f32.mrb[6].mxu0  ;;  %v1372_v27 = vshrl.u32 %v1341_v30, 16  ;;  %v1375_v39 = vshll.u32 %v1341_v30, 16 }
 0x1c2   : > { %v1306_v40 = vmul.f32 %v3077_v7, %v1265_v34  ;;  %v1266_v41 = vadd.f32 %v2374_v28, %v3075_v4  ;;  %v1172_v42 = vpop.f32.mrb[7].mxu0  ;;  %v3104_v46 = vsel %vm3091_vm14, %v1340_v37, 0  ;;  %vm1285_vm15 = vcmp.gt.f32.partialorder %v1265_v34, 0.0 }
 0x1c3   : > { %v1304_v47 = vmul.f32 %v3077_v7, %v1263_v38  ;;  %v1264_v48 = vadd.f32 %v3075_v4, %v1172_v42  ;;  %v1438_v29 = vrot.slane %v1375_v39, 1  ;;  %vm1283_vm1 = vcmp.gt.f32.partialorder %v1263_v38, 0.0 }
 0x1c4   : > { %vm1286_vm2 = vcmp.gt.f32.partialorder %v1266_v41, 0.0  ;;  %v1307_v50 = vmul.f32 %v3077_v7, %v1266_v41  ;;  %v1374_v45 = vrot.slane %v1372_v27, 7  ;;  %v1326_v53 = vsel %vm1285_vm15, %v1265_v34, %v1306_v40 }
 0x1c5   : > { %vm1284_vm4 = vcmp.gt.f32.partialorder %v1264_v48, 0.0  ;;  %v1305_v51 = vmul.f32 %v3077_v7, %v1264_v48  ;;  %v1439_v32 = vor.u32 %v1438_v29, %v1372_v27  ;;  %v1324_v58 = vsel %vm1283_vm1, %v1263_v38, %v1304_v47 }
 0x1c6   : > { %v1327_v54 = vsel %vm1286_vm2, %v1266_v41, %v1307_v50  ;;  %v3110_v55 = vor.u32 %v1375_v39, %v1374_v45  ;;  %v531_v38 = vstv %s2839_s28 }
 0x1c7   : > { %v2377_v56 = vpop.f32.mrb[8].mxu0  ;;  %v1461_v57 = vsel %vm2774_vm3, %v1439_v32, 0  ;;  %v1325_v36 = vsel %vm1284_vm4, %v1264_v48, %v1305_v51  ;;  %v3114_v43 = vpack.c.bf16 %v1327_v54, %v1326_v53  ;;  %v1365_v53 = vshrl.u32 %v3104_v46, 16 }
 0x1c8   : > { %v1269_v60 = vadd.f32 %v2377_v56, %v3075_v4  ;;  %1502 = vrot.lane.b32.xlu0 %v1461_v57, %s2651_s26  ;;  %v1185_v61 = vpop.f32.mrb[9].mxu0  ;;  %v1342_v62 = vpack.c.bf16 %v1325_v36, %v1324_v58  ;;  %vm3175_vm2 = vcmp.eq.s32.totalorder %v531_v38, 1 }
 0x1c9   : > { %v1267_v0 = vadd.f32 %v3075_v4, %v1185_v61  ;;  %v2378_v1 = vpop.f32.mrb[10].mxu0  ;;  %v1389_v2 = vshll.u32 %v3114_v43, 16  ;;  %v1386_v10 = vshrl.u32 %v3114_v43, 16 }
 0x1ca   : > { %v1310_v52 = vmul.f32 %v3077_v7, %v1269_v60  ;;  %v1270_v6 = vadd.f32 %v2378_v1, %v3075_v4  ;;  %1480 = vrot.lane.b32.xlu1 %v1342_v62, %s2650_s20  ;;  %v1188_v9 = vpop.f32.mrb[11].mxu0  ;;  %v1379_v12 = vshrl.u32 %v1342_v62, 16  ;;  %vm1289_vm5 = vcmp.gt.f32.partialorder %v1269_v60, 0.0 }
 0x1cb   : > { %v1308_v11 = vmul.f32 %v3077_v7, %v1267_v0  ;;  %v1268_v13 = vadd.f32 %v3075_v4, %v1188_v9  ;;  %v1442_v15 = vrot.slane %v1389_v2, 1  ;;  %vm1287_vm10 = vcmp.gt.f32.partialorder %v1267_v0, 0.0 }
 0x1cc   : > { %vm1290_vm11 = vcmp.gt.f32.partialorder %v1270_v6, 0.0  ;;  %v1311_v5 = vmul.f32 %v3077_v7, %v1270_v6  ;;  %1482 = vrot.lane.b32.xlu0 %v3114_v43, %s2650_s20  ;;  %v1382_v16 = vshll.u32 %v1342_v62, 16  ;;  %v1381_v20 = vrot.slane %v1379_v12, 7 }
 0x1cd   : > { %vm1288_vm12 = vcmp.gt.f32.partialorder %v1268_v13, 0.0  ;;  %v1309_v17 = vmul.f32 %v3077_v7, %v1268_v13  ;;  %v1443_v19 = vor.u32 %v1442_v15, %v1386_v10  ;;  %v1330_v21 = vsel %vm1289_vm5, %v1269_v60, %v1310_v52 }
 0x1ce   : > { %v1440_v14 = vrot.slane %v1382_v16, 1  ;;  %v1331_v22 = vsel %vm1290_vm11, %v1270_v6, %v1311_v5  ;;  %v1328_v30 = vsel %vm1287_vm10, %v1267_v0, %v1308_v11  ;;  %v3147_v37 = vor.u32 %v1382_v16, %v1381_v20 }
 0x1cf   : > { %v2381_v25 = vpop.f32.mrb[12].mxu0  ;;  %v1463_v24 = vsel %vm2774_vm3, %v1443_v19, 0  ;;  %v3141_v18 = vpack.c.bf16 %v1331_v22, %v1330_v21  ;;  %v1329_v31 = vsel %vm1288_vm12, %v1268_v13, %v1309_v17  ;;  %v1388_v51 = vrot.slane %v1386_v10, 7 }
 0x1d0   : > { %v1273_v26 = vadd.f32 %v2381_v25, %v3075_v4  ;;  %1506 = vrot.lane.b32.xlu0 %v1463_v24, %s2651_s26  ;;  %v1201_v33 = vpop.f32.mrb[13].mxu0  ;;  %v1441_v34 = vor.u32 %v1440_v14, %v1379_v12  ;;  %v3145_v35 = vpack.c.bf16 %v1329_v31, %v1328_v30  ;;  %v1367_v13 = vrot.slane %v1365_v53, 7 }
 0x1d1   : > { %v1271_v28 = vadd.f32 %v3075_v4, %v1201_v33  ;;  %v2382_v27 = vpop.f32.mrb[14].mxu0  ;;  %v1400_v39 = vshrl.u32 %v3141_v18, 16  ;;  %v1403_v40 = vshll.u32 %v3141_v18, 16  ;;  %v3185_v15 = vor.u32 %v1389_v2, %v1388_v51 }
 0x1d2   : > { %vm1293_vm13 = vcmp.gt.f32.partialorder %v1273_v26, 0.0  ;;  %v1314_v41 = vmul.f32 %v3077_v7, %v1273_v26  ;;  %v1462_v42 = vsel %vm2774_vm3, %v1441_v34, 0  ;;  %v1274_v47 = vadd.f32 %v2382_v27, %v3075_v4  ;;  %v1204_v48 = vpop.f32.mrb[15].mxu0 }
 0x1d3   : > { %vm1291_vm14 = vcmp.gt.f32.partialorder %v1271_v28, 0.0  ;;  %v1312_v29 = vmul.f32 %v3077_v7, %v1271_v28  ;;  %1504 = vrot.lane.b32.xlu1 %v1462_v42, %s2651_s26  ;;  %v1272_v50 = vadd.f32 %v3075_v4, %v1204_v48  ;;  %v1446_v45 = vrot.slane %v1403_v40, 1 }
 0x1d4   : > { %vm1294_vm15 = vcmp.gt.f32.partialorder %v1274_v47, 0.0  ;;  %v1315_v32 = vmul.f32 %v3077_v7, %v1274_v47  ;;  %1486 = vrot.lane.b32.xlu0 %v3141_v18, %s2650_s20  ;;  %v1396_v57 = vshll.u32 %v3145_v35, 16  ;;  %v1393_v58 = vshrl.u32 %v3145_v35, 16 }
 0x1d5   : > { %vm1292_vm1 = vcmp.gt.f32.partialorder %v1272_v50, 0.0  ;;  %v1313_v54 = vmul.f32 %v3077_v7, %v1272_v50  ;;  %v1447_v56 = vor.u32 %v1446_v45, %v1400_v39  ;;  %v1334_v36 = vsel %vm1293_vm13, %v1273_v26, %v1314_v41 }
 0x1d6   : > { %v1335_v60 = vsel %vm1294_vm15, %v1274_v47, %v1315_v32  ;;  %v1332_v61 = vsel %vm1291_vm14, %v1271_v28, %v1312_v29  ;;  %v1444_v1 = vrot.slane %v1396_v57, 1  ;;  %v1402_v5 = vrot.slane %v1400_v39, 7 }
 0x1d7   : > { %1484 = vrot.lane.b32.xlu1 %v3145_v35, %s2650_s20  ;;  %v2385_v62 = vpop.f32.mrb[16].mxu0  ;;  %v1465_v0 = vsel %vm2774_vm3, %v1447_v56, 0  ;;  %v1347_v52 = vpack.c.bf16 %v1335_v60, %v1334_v36  ;;  %v1333_v6 = vsel %vm1292_vm1, %v1272_v50, %v1313_v54  ;;  %v1395_v31 = vrot.slane %v1393_v58, 7 }
 0x1d8   : > { %v2443_v10 = vadd.f32 %v2385_v62, %v3064_v3  ;;  %1510 = vrot.lane.b32.xlu0 %v1465_v0, %s2651_s26  ;;  %v1217_v12 = vpop.f32.mrb[17].mxu0  ;;  %v1346_v11 = vpack.c.bf16 %v1333_v6, %v1332_v61  ;;  %v1445_v17 = vor.u32 %v1444_v1, %v1393_v58  ;;  %v1368_v42 = vshll.u32 %v3104_v46, 16 }
 0x1d9   : > { %v2444_v16 = vadd.f32 %v1217_v12, %v3066_v44  ;;  %v2386_v19 = vpop.f32.mrb[18].mxu0  ;;  %v1414_v20 = vshrl.u32 %v1347_v52, 16  ;;  %v1417_v25 = vshll.u32 %v1347_v52, 16  ;;  %v3208_v45 = vor.u32 %v1403_v40, %v1402_v5 }
 0x1da   : > { %v1277_v14 = vadd.f32 %v2443_v10, %v3075_v4  ;;  %v2445_v3 = vadd.f32 %v2386_v19, %v3068_v49  ;;  %v1220_v21 = vpop.f32.mrb[19].mxu0  ;;  %v1410_v22 = vshll.u32 %v1346_v11, 16  ;;  %v1464_v43 = vsel %vm2774_vm3, %v1445_v17, 0 }
 0x1db   : > { %v1275_v24 = vadd.f32 %v2444_v16, %v3075_v4  ;;  %v2446_v2 = vadd.f32 %v1220_v21, %v3070_v23  ;;  %v1407_v30 = vshrl.u32 %v1346_v11, 16  ;;  %1508 = vrot.lane.b32.xlu1 %v1464_v43, %s2651_s26  ;;  %v1416_v35 = vrot.slane %v1414_v20, 7 }
 0x1dc   : > { %v1318_v44 = vmul.f32 %v3077_v7, %v1277_v14  ;;  %v1278_v26 = vadd.f32 %v2445_v3, %v3075_v4  ;;  %1490 = vrot.lane.b32.xlu0 %v1347_v52, %s2650_s20  ;;  %v1448_v49 = vrot.slane %v1410_v22, 1  ;;  %vm1297_vm5 = vcmp.gt.f32.partialorder %v1277_v14, 0.0 }
 0x1dd   : > { %vm1295_vm4 = vcmp.gt.f32.partialorder %v1275_v24, 0.0  ;;  %v1316_v33 = vmul.f32 %v3077_v7, %v1275_v24  ;;  %v1276_v34 = vadd.f32 %v2446_v2, %v3075_v4  ;;  %v1409_v27 = vrot.slane %v1407_v30, 7  ;;  %v2593_v2 = vld [vmem:[%s3413_s4 + $0x10] sm:$0x3f]  }
 0x1de   : > { %v1319_v38 = vmul.f32 %v3077_v7, %v1278_v26  ;;  %v1449_v23 = vor.u32 %v1448_v49, %v1407_v30  ;;  %vm1298_vm10 = vcmp.gt.f32.partialorder %v1278_v26, 0.0  ;;  %v1450_v39 = vrot.slane %v1417_v25, 1 }
 0x1df   : > { %vm1296_vm11 = vcmp.gt.f32.partialorder %v1276_v34, 0.0  ;;  %v1317_v28 = vmul.f32 %v3077_v7, %v1276_v34  ;;  %1488 = vrot.lane.b32.xlu1 %v1346_v11, %s2650_s20  ;;  %v1336_v41 = vsel %vm1295_vm4, %v1275_v24, %v1316_v33  ;;  %v1338_v47 = vsel %vm1297_vm5, %v1277_v14, %v1318_v44 }
 0x1e0   : > { %v1339_v48 = vsel %vm1298_vm10, %v1278_v26, %v1319_v38  ;;  %v1466_v4 = vsel %vm2774_vm3, %v1449_v23, 0  ;;  %v1398_v7 = vor.u32 %v1396_v57, %v1395_v31  ;;  %v3210_v32 = vor.u32 %v1417_v25, %v1416_v35 }
 0x1e1   : > { %v1337_v29 = vsel %vm1296_vm11, %v1276_v34, %v1317_v28  ;;  %v1349_v50 = vpack.c.bf16 %v1339_v48, %v1338_v47  ;;  %v1451_v54 = vor.u32 %v1450_v39, %v1414_v20  ;;  %v3214_v58 = vor.u32 %v1410_v22, %v1409_v27 }
 0x1e2   : > { %v1348_v51 = vpack.c.bf16 %v1337_v29, %v1336_v41  ;;  %v3216_v36 = vor.u32 %v1368_v42, %v1367_v13  ;;  %v1436_v52 = vrot.slane %v1368_v42, 1  ;;  %v1430_v8 = vsel %vm2943_vm6, 0, %v3147_v37 }
 0x1e3   : > { %v1363_v56 = vsel %vm3175_vm2, %v1349_v50, 0  ;;  %1512 = vrot.lane.b32.xlu1 %v1466_v4, %s2651_s26  ;;  %v1467_v0 = vsel %vm2774_vm3, %v1451_v54, 0  ;;  %v1714_v43 = vsel %vm842_vm0, %v3121_v63, 0  ;;  %v1432_v63 = vsel %vm2943_vm6, 0, %v1398_v7 }
 0x1e4   : > { %1572 = vrot.lane.b32.xlu0 %v1348_v51, %s2650_s20  ;;  %v1559_v60 = vshrl.u32 %v1348_v51, 16  ;;  %v1562_v18 = vshll.u32 %v1348_v51, 16  ;;  %v1814_v40 = vshrl.u32 %v1363_v56, 16  ;;  %v1817_v1 = vshll.u32 %v1363_v56, 16 }
 0x1e5   : > { %v1437_v11 = vor.u32 %v1436_v52, %v1365_v53  ;;  %v1433_v49 = vsel %vm2943_vm6, 0, %v3208_v45  ;;  %v1434_v39 = vsel %vm2943_vm6, 0, %v3214_v58  ;;  %v1435_v48 = vsel %vm2943_vm6, 0, %v3210_v32  ;;  %v3321_v52 = vld [vmem:[%s3415_s6] ss:$0 sm:$0xff] }
 0x1e6   : > { %v1567_v61 = vrot.slane %v1562_v18, 1  ;;  %v1561_v62 = vrot.slane %v1559_v60, 7  ;;  %v1816_v57 = vrot.slane %v1814_v40, 7  ;;  %v1822_v13 = vrot.slane %v1817_v1, 1 }
 0x1e7   : > { %1514 = vrot.lane.b32.xlu1 %v1467_v0, %s2651_s26  ;;  %v1460_v5 = vsel %vm2774_vm3, %v1437_v11, 0  ;;  %v1428_v32 = vsel %vm2943_vm6, 0, %v3216_v36  ;;  %v2594_v11 = vld [vmem:[%s2772_s23 + $0x10] sm:$0xff] }
 0x1e8   : > { %1476 = vrot.lane.b32.xlu0 %v3104_v46, %s2650_s20  ;;  %v1568_v6 = vor.u32 %v1567_v61, %v1559_v60  ;;  %v1564_v9 = vor.u32 %v1562_v18, %v1561_v62  ;;  %v3225_v10 = vor.u32 %v1817_v1, %v1816_v57  ;;  %v1823_v16 = vor.u32 %v1822_v13, %v1814_v40 }
 0x1e9   : > { %v1429_v46 = vsel %vm2943_vm6, 0, %v3110_v55  ;;  %v1431_v55 = vsel %vm2943_vm6, 0, %v3185_v15  ;;  %v1848_v61 = vsel %vm842_vm0, %v2593_v2, 0 }
 0x1ea   : > { %v1570_v12 = vsel %vm2774_vm3, %v1568_v6, 0  ;;  %v1825_v17 = vsel %vm2774_vm3, %v1823_v16, 0  ;;  %v1566_v51 = vsel %vm2943_vm6, 0, %v1564_v9  ;;  %v1821_v57 = vsel %vm2943_vm6, 0, %v3225_v10 }
 0x1eb   : > { %1575 = vrot.lane.b32.xlu1 %v1570_v12, %s2651_s26 }
 0x1ec   : > { %1827 = vrot.lane.b32.xlu0 %v1363_v56, %s2650_s20 }
 0x1ef   : > { %1500 = vrot.lane.b32.xlu1 %v1460_v5, %s2651_s26 }
 0x1f3   : > { %1830 = vrot.lane.b32.xlu1 %v1825_v17, %s2651_s26  ;;  %v2595_v17 = vld [vmem:[%s2772_s23] sm:$0xff] }
 0x233   : > { %v1479_v19 = vpop.permute.xlu0 %1478 }
 0x234   : > { %v1521_v53 = vsel %vm735_vm7, %v1429_v46, %v1479_v19 }
 0x23a   : > { %v1503_v20 = vpop.permute.xlu0 %1502 }
 0x23b   : > { %v1543_v14 = vsel %vm766_vm8, %v1521_v53, %v1503_v20  ;;  %v2596_v53 = vld [vmem:[%s2772_s23 + $0x18] sm:$0xff] }
 0x23c   : > { %2389 = vmatprep.mubr.msk.bf16.mxu1 %vm821_vm9, %v1543_v14  ;;  %v1481_v21 = vpop.permute.xlu1 %1480 }
 0x23d   : > { %v1524_v25 = vsel %vm735_vm7, %v1430_v8, %v1481_v21 }
 0x23e   : > { %v1483_v3 = vpop.permute.xlu0 %1482 }
 0x23f   : > { %v1527_v30 = vsel %vm735_vm7, %v1431_v55, %v1483_v3 }
 0x242   : > { %v1507_v22 = vpop.permute.xlu0 %1506 }
 0x243   : > { %v1547_v37 = vsel %vm766_vm8, %v1527_v30, %v1507_v22 }
 0x245   : > { %v1505_v24 = vpop.permute.xlu1 %1504 }
 0x246   : > { %v1545_v44 = vsel %vm766_vm8, %v1524_v25, %v1505_v24  ;;  %v1487_v31 = vpop.permute.xlu0 %1486  ;;  %v2598_v24 = vld [vmem:[%s2772_s23 + $0x30] sm:$0xff] }
 0x247   : > { %2390 = vmatmul.mubr.msk.bf16.vlgmr.msra.gmra.mrb[4].mxu1 %vm821_vm9, %v1545_v44  ;;  %v1533_v35 = vsel %vm735_vm7, %v1433_v49, %v1487_v31 }
 0x248   : > { %2393 = vmatprep.mubr.msk.bf16.mxu1 %vm821_vm9, %v1547_v37  ;;  %2406 = vmatpush3.bf16.msra.mxu1 %v1714_v43 }
 0x249   : > { %v1485_v15 = vpop.permute.xlu1 %1484  ;;  %2521 = vmatprep.subr.msk.bf16.mxu1 %vm842_vm0, %v2593_v2 }
 0x24a   : > { %v1511_v26 = vpop.permute.xlu0 %1510  ;;  %v1530_v33 = vsel %vm735_vm7, %v1432_v63, %v1485_v15  ;;  %v2600_v15 = vld [vmem:[%s2772_s23 + $0x38] sm:$0xff] }
 0x24b   : > { %v1551_v23 = vsel %vm766_vm8, %v1533_v35, %v1511_v26  ;;  %v2601_v26 = vld [vmem:[%s2772_s23 + $0x28] sm:$0xff] }
 0x24d   : > { %v1509_v34 = vpop.permute.xlu1 %1508 }
 0x24e   : > { %v1549_v38 = vsel %vm766_vm8, %v1530_v33, %v1509_v34  ;;  %v1491_v27 = vpop.permute.xlu0 %1490 }
 0x24f   : > { %2394 = vmatmul.mubr.msk.bf16.gmra.mrb[8].mxu1 %vm821_vm9, %v1549_v38  ;;  %v1539_v29 = vsel %vm735_vm7, %v1435_v48, %v1491_v27 }
 0x250   : > { %2397 = vmatprep.mubr.msk.bf16.mxu1 %vm821_vm9, %v1551_v23 }
 0x251   : > { %v1489_v28 = vpop.permute.xlu1 %1488 }
 0x252   : > { %v1536_v41 = vsel %vm735_vm7, %v1434_v39, %v1489_v28  ;;  %v2602_v28 = vld [vmem:[%s2772_s23 + $0x50] sm:$0xff] }
 0x255   : > { %v1513_v42 = vpop.permute.xlu1 %1512 }
 0x256   : > { %v1553_v47 = vsel %vm766_vm8, %v1536_v41, %v1513_v42  ;;  %v1573_v4 = vpop.permute.xlu0 %1572  ;;  %v2603_v42 = vld [vmem:[%s2772_s23 + $0x40] sm:$0xff] }
 0x257   : > { %2398 = vmatmul.mubr.msk.bf16.gmra.mrb[12].mxu1 %vm821_vm9, %v1553_v47  ;;  %v1579_v7 = vsel %vm735_vm7, %v1566_v51, %v1573_v4  ;;  %v2604_v4 = vld [vmem:[%s2772_s23 + $0x58] sm:$0xff] }
 0x259   : > { %v1515_v50 = vpop.permute.xlu1 %1514 }
 0x25a   : > { %v1555_v45 = vsel %vm766_vm8, %v1539_v29, %v1515_v50  ;;  %v1477_v56 = vpop.permute.xlu0 %1476  ;;  %v2605_v50 = vld [vmem:[%s2772_s23 + $0x48] sm:$0xff] }
 0x25b   : > { %2401 = vmatprep.mubr.msk.bf16.mxu1 %vm821_vm9, %v1555_v45  ;;  %v1518_v60 = vsel %vm735_vm7, %v1428_v32, %v1477_v56  ;;  %v2606_v32 = vld [vmem:[%s2772_s23 + $0x70] sm:$0xff] }
 0x25d   : > { %v1576_v54 = vpop.permute.xlu1 %1575 }
 0x25e   : > { %v1581_v58 = vsel %vm766_vm8, %v1579_v7, %v1576_v54  ;;  %v1828_v36 = vpop.permute.xlu0 %1827 }
 0x25f   : > { %2402 = vmatmul.mubr.msk.bf16.gmra.mrb[16].mxu1 %vm821_vm9, %v1581_v58  ;;  %v1834_v0 = vsel %vm735_vm7, %v1821_v57, %v1828_v36  ;;  %v2608_v57 = vld [vmem:[%s2772_s23 + $0x78] sm:$0xff] }
 0x261   : > { %v1501_v18 = vpop.permute.xlu1 %1500 }
 0x262   : > { %v1541_v40 = vsel %vm766_vm8, %v1518_v60, %v1501_v18 }
 0x263   : > { %2407 = vmatprep.mubr.msk.bf16.mxu1 %vm821_vm9, %v1541_v40 }
 0x265   : > { %v1831_v62 = vpop.permute.xlu1 %1830 }
 0x266   : > { %v1836_v1 = vsel %vm766_vm8, %v1834_v0, %v1831_v62 }
 0x267   : > { %2408 = vmatmul.mubr.msk.bf16.vlgmr.msra.gmra.mrb[4].mxu1 %vm821_vm9, %v1543_v14  ;;  %v2597_v14 = vld [vmem:[%s2772_s23 + $0x8] sm:$0xff] }
 0x268   : > { %2424 = vmatpush3.bf16.msra.mxu1 %v1848_v61  ;;  %2411 = vmatprep.mubr.msk.bf16.mxu1 %vm821_vm9, %v1545_v44  ;;  %v2607_v61 = vld [vmem:[%s2772_s23 + $0x60] sm:$0xff] }
 0x26f   : > { %2412 = vmatmul.mubr.msk.bf16.gmra.mrb[8].mxu1 %vm821_vm9, %v1547_v37 }
 0x270   : > { %2415 = vmatprep.mubr.msk.bf16.mxu1 %vm821_vm9, %v1549_v38 }
 0x277   : > { %2416 = vmatmul.mubr.msk.bf16.gmra.mrb[12].mxu1 %vm821_vm9, %v1551_v23 }
 0x278   : > { %2419 = vmatprep.mubr.msk.bf16.mxu1 %vm821_vm9, %v1553_v47 }
 0x27f   : > { %2420 = vmatmul.mubr.msk.bf16.gmra.mrb[16].mxu1 %vm821_vm9, %v1555_v45 }
 0x280   : > { %2425 = vmatprep.mubr.msk.bf16.mxu1 %vm821_vm9, %v1545_v44  ;;  %v2599_v44 = vld [vmem:[%s2772_s23 + $0x20] sm:$0xff] }
 0x287   : > { %2426 = vmatmul.mubr.msk.bf16.vlgmr.msra.gmra.mrb[4].mxu1 %vm821_vm9, %v1547_v37 }
 0x288   : > { %2429 = vmatprep.mubr.msk.bf16.mxu1 %vm821_vm9, %v1549_v38 }
 0x28f   : > { %2430 = vmatmul.mubr.msk.bf16.gmra.mrb[8].mxu1 %vm821_vm9, %v1551_v23 }
 0x290   : > { %2433 = vmatprep.mubr.msk.bf16.mxu1 %vm821_vm9, %v1553_v47 }
 0x297   : > { %2434 = vmatmul.mubr.msk.bf16.gmra.mrb[12].mxu1 %vm821_vm9, %v1555_v45 }
 0x298   : > { %2437 = vmatprep.mubr.msk.bf16.mxu1 %vm821_vm9, %v1581_v58 }
 0x29f   : > { %2438 = vmatmul.mubr.msk.bf16.gmra.mrb[16].mxu1 %vm821_vm9, %v1836_v1  ;;  %v2609_v1 = vld [vmem:[%s2772_s23 + $0x68] sm:$0xff] }
 0x35a   : > { %v2427_v6 = vpop.f32.mrb[4].mxu1 }
 0x35b   : > { %v1972_v9 = vadd.f32 %v2427_v6, %v3321_v52  ;;  %v1884_v12 = vpop.f32.mrb[5].mxu1 }
 0x35c   : > { %v1970_v59 = vadd.f32 %v3321_v52, %v1884_v12  ;;  %v2428_v10 = vpop.f32.mrb[6].mxu1 }
 0x35d   : > { %v1988_v13 = vadd.f32 %v2594_v11, %v1972_v9  ;;  %v1973_v5 = vadd.f32 %v2428_v10, %v3321_v52  ;;  %v1887_v16 = vpop.f32.mrb[7].mxu1 }
 0x35e   : > { %v1986_v19 = vadd.f32 %v2595_v17, %v1970_v59  ;;  %v1971_v46 = vadd.f32 %v3321_v52, %v1887_v16 }
 0x35f   : > { %2004 = vst.msk [vmem:[%s3329_s18 + $0x10] sm:$0xff] %vm735_vm7, %v1988_v13  ;;  %v1989_v20 = vadd.f32 %v2596_v53, %v1973_v5 }
 0x360   : > { %2002 = vst.msk [vmem:[%s3329_s18] sm:$0xff] %vm735_vm7, %v1986_v19  ;;  %v1987_v3 = vadd.f32 %v2597_v14, %v1971_v46 }
 0x361   : > { %2005 = vst.msk [vmem:[%s3329_s18 + $0x18] sm:$0xff] %vm735_vm7, %v1989_v20 }
 0x362   : > { %2003 = vst.msk [vmem:[%s3329_s18 + $0x8] sm:$0xff] %vm735_vm7, %v1987_v3  ;;  %v2431_v21 = vpop.f32.mrb[8].mxu1 }
 0x363   : > { %v1976_v22 = vadd.f32 %v2431_v21, %v3321_v52  ;;  %v1900_v8 = vpop.f32.mrb[9].mxu1 }
 0x364   : > { %v1974_v25 = vadd.f32 %v3321_v52, %v1900_v8  ;;  %v2432_v55 = vpop.f32.mrb[10].mxu1 }
 0x365   : > { %v1992_v43 = vadd.f32 %v2598_v24, %v1976_v22  ;;  %v1977_v2 = vadd.f32 %v2432_v55, %v3321_v52  ;;  %v1903_v30 = vpop.f32.mrb[11].mxu1 }
 0x366   : > { %v1990_v37 = vadd.f32 %v2599_v44, %v1974_v25  ;;  %v1975_v31 = vadd.f32 %v3321_v52, %v1903_v30 }
 0x367   : > { %2008 = vst.msk [vmem:[%s3329_s18 + $0x30] sm:$0xff] %vm735_vm7, %v1992_v43  ;;  %v1993_v63 = vadd.f32 %v2600_v15, %v1977_v2 }
 0x368   : > { %2006 = vst.msk [vmem:[%s3329_s18 + $0x20] sm:$0xff] %vm735_vm7, %v1990_v37  ;;  %v1991_v49 = vadd.f32 %v2601_v26, %v1975_v31 }
 0x369   : > { %2009 = vst.msk [vmem:[%s3329_s18 + $0x38] sm:$0xff] %vm735_vm7, %v1993_v63 }
 0x36a   : > { %2007 = vst.msk [vmem:[%s3329_s18 + $0x28] sm:$0xff] %vm735_vm7, %v1991_v49  ;;  %v2435_v33 = vpop.f32.mrb[12].mxu1 }
 0x36b   : > { %v1980_v34 = vadd.f32 %v2435_v33, %v3321_v52  ;;  %v1916_v35 = vpop.f32.mrb[13].mxu1 }
 0x36c   : > { %v1978_v38 = vadd.f32 %v3321_v52, %v1916_v35  ;;  %v2436_v23 = vpop.f32.mrb[14].mxu1 }
 0x36d   : > { %v1996_v27 = vadd.f32 %v2602_v28, %v1980_v34  ;;  %v1981_v39 = vadd.f32 %v2436_v23, %v3321_v52  ;;  %v1919_v41 = vpop.f32.mrb[15].mxu1 }
 0x36e   : > { %v1994_v47 = vadd.f32 %v2603_v42, %v1978_v38  ;;  %v1979_v48 = vadd.f32 %v3321_v52, %v1919_v41 }
 0x36f   : > { %2012 = vst.msk [vmem:[%s3329_s18 + $0x50] sm:$0xff] %vm735_vm7, %v1996_v27  ;;  %v1997_v29 = vadd.f32 %v2604_v4, %v1981_v39 }
 0x370   : > { %2010 = vst.msk [vmem:[%s3329_s18 + $0x40] sm:$0xff] %vm735_vm7, %v1994_v47  ;;  %v1995_v45 = vadd.f32 %v2605_v50, %v1979_v48 }
 0x371   : > { %2013 = vst.msk [vmem:[%s3329_s18 + $0x58] sm:$0xff] %vm735_vm7, %v1997_v29 }
 0x372   : > { %2011 = vst.msk [vmem:[%s3329_s18 + $0x48] sm:$0xff] %vm735_vm7, %v1995_v45  ;;  %v2439_v51 = vpop.f32.mrb[16].mxu1 }
 0x373   : > { %v1984_v7 = vadd.f32 %v2439_v51, %v3321_v52  ;;  %v1932_v54 = vpop.f32.mrb[17].mxu1 }
 0x374   : > { %v1982_v56 = vadd.f32 %v3321_v52, %v1932_v54  ;;  %v2440_v58 = vpop.f32.mrb[18].mxu1 }
 0x375   : > { %v2000_v60 = vadd.f32 %v2606_v32, %v1984_v7  ;;  %v1985_v18 = vadd.f32 %v2440_v58, %v3321_v52  ;;  %v1935_v40 = vpop.f32.mrb[19].mxu1 }
 0x376   : > { %v1998_v36 = vadd.f32 %v2607_v61, %v1982_v56  ;;  %v1983_v62 = vadd.f32 %v3321_v52, %v1935_v40 }
 0x377   : > { %2016 = vst.msk [vmem:[%s3329_s18 + $0x70] sm:$0xff] %vm735_vm7, %v2000_v60  ;;  %v2001_v0 = vadd.f32 %v2608_v57, %v1985_v18 }
 0x378   : > { %2014 = vst.msk [vmem:[%s3329_s18 + $0x60] sm:$0xff] %vm735_vm7, %v1998_v36  ;;  %v1999_v6 = vadd.f32 %v2609_v1, %v1983_v62 }
 0x379   : > { %2017 = vst.msk [vmem:[%s3329_s18 + $0x78] sm:$0xff] %vm735_vm7, %v2001_v0 }
 0x37a   : > { %2015 = vst.msk [vmem:[%s3329_s18 + $0x68] sm:$0xff] %vm735_vm7, %v1999_v6 }
 0x37b PF: > { %s19_s11 = sadd.s32 1, %s2648_s11   ;;  %s3427_s29 = smov %s2640_s9 }
 0x37c   : > { %p16_p13 = scmp.ge.s32.totalorder %s19_s11, 6   ;;  %s3428_s30 = smov %s2644_s10 }
 0x37d   : > { %s3429_s9 = smov %s3432_s7  ;;  %s3430_s10 = smov %s3436_s12 }
 0x37e   :  { %18 = sbr.rel (!%p16_p13) target bundleno = 3 (0x3), region = 92 }

</bundles_post_ra>
